<compile_context>
chip_gen: v5e
topology: v5e:2x2
jax: 0.10.0
libtpu: 0.0.40
codegen_flags: <defaults>
</compile_context>

<pallas_src>
import functools

import jax
import jax.numpy as jnp
from jax import lax
from jax.experimental import pallas as pl
from jax.experimental.pallas import tpu as pltpu

_BIG = 1.0e9


def _sum_all_2d(x):
    """Full reduce of a 2-D tile to shape (1, 1): lane reduce then sublane reduce."""
    return jnp.sum(jnp.sum(x, axis=1, keepdims=True), axis=0, keepdims=True)


def _round_up(x, m):
    return (x + m - 1) // m * m


def _metric_loss_kernel(labels_sm,            # SMEM (n_pad,) int32   [scalar prefetch]
                        lab_row_ref,          # (1, T) int32          anchor labels (lane layout)
                        lab_col_ref,          # (n_pad, 1) int32      all labels (sublane), resident
                        xn_ref,               # (n_pad, C) f32        normalized embeddings, resident
                        logits_ref,           # (T, C) f32            raw logits of this anchor tile
                        out_ref,              # (1, 1) f32
                        d_ap_ref,             # VMEM (n_pad, T) f32   raw distances (anchors on lanes)
                        d_an_ref,             # VMEM (n_pad, T) f32   masked distances (+BIG if invalid neg)
                        ce_acc,               # VMEM (T, 1) f32       per-row CE partials
                        tsum_acc,             # VMEM (8, T) f32       triplet-loss partial sums
                        tcnt_acc,             # VMEM (8, T) f32       nonzero-triplet partial counts
                        *, n_pad, n_real, num_classes, tile_t, margin, lam1, lam2,
                        unroll):
    i = pl.program_id(0)
    row0 = pl.multiple_of(i * tile_t, tile_t)

    @pl.when(i == 0)
    def _init():
        ce_acc[...] = jnp.zeros_like(ce_acc)
        tsum_acc[...] = jnp.zeros_like(tsum_acc)
        tcnt_acc[...] = jnp.zeros_like(tcnt_acc)

    # ------------------ cross-entropy over this anchor tile ------------------
    lt = logits_ref[...].astype(jnp.float32)                              # (T, C)
    lab_t = lab_col_ref[pl.ds(row0, tile_t), :]                           # (T, 1) int32
    mrow = jnp.max(lt, axis=1, keepdims=True)
    lse = mrow + jnp.log(jnp.sum(jnp.exp(lt - mrow), axis=1, keepdims=True))
    cls_iota = lax.broadcasted_iota(jnp.int32, (tile_t, num_classes), 1)
    lbl_logit = jnp.sum(jnp.where(cls_iota == lab_t, lt, 0.0),
                        axis=1, keepdims=True)
    ce_valid = (lab_t >= 0).astype(jnp.float32)                           # padded rows -> 0
    ce_acc[...] += (lse - lbl_logit) * ce_valid                           # (T, 1)

    # ------------- pairwise distances (transposed: anchors on lanes) ----------
    x_t = xn_ref[pl.ds(row0, tile_t), :]                                  # (T, C)
    gram_t = lax.dot_general(xn_ref[...], x_t,
                             dimension_numbers=(((1,), (1,)), ((), ())),
                             preferred_element_type=jnp.float32,
                             precision=lax.Precision.HIGHEST)             # (n_pad, T)
    d_raw = jnp.sqrt(jnp.maximum(2.0 - 2.0 * gram_t, 0.0))                # unit rows: ||a-b||^2 = 2-2a.b
    d_ap_ref[...] = d_raw

    lab_anchor = lab_row_ref[...]                                         # (1, T)
    lab_all = lab_col_ref[...]                                            # (n_pad, 1)
    # n is NOT a valid negative of anchor a if labels match or either is padding.
    not_neg = (lab_all == lab_anchor) | (lab_all < 0) | (lab_anchor < 0)  # (n_pad, T)
    d_an_ref[...] = jnp.where(not_neg, _BIG, d_raw)

    anchor_gidx = row0 + lax.broadcasted_iota(jnp.int32, (1, tile_t), 1)  # (1, T)

    # ------------------ triplet loop over candidate positives p ------------------
    groups = n_pad // 8

    def _fold_rows8(x):
        """(n_pad, T) -> (8, T): sum over aligned sublane groups (pure VPU adds)."""
        acc = x[0:8, :]
        for g in range(1, groups):
            acc = acc + x[8 * g:8 * (g + 1), :]
        return acc

    zeros8 = jnp.zeros((8, tile_t), jnp.float32)

    def body(p, carry):
        ts8, tc8 = carry
        lab_p = labels_sm[p]                                              # SMEM scalar read
        pos_gate = (lab_anchor == lab_p) & (anchor_gidx != p)             # (1, T)
        d_ap = d_ap_ref[pl.ds(p, 1), :]                                   # (1, T) dynamic row load
        # Fold the positive gate into the broadcast row as a -BIG sentinel so the
        # (n_pad, T) work is just: sub, relu, two folded adds, one compare.
        d_thr = jnp.where(pos_gate, d_ap + margin, -_BIG)                 # (1, T)
        vm = jnp.maximum(d_thr - d_an_ref[...], 0.0)                      # (n_pad, T)
        ts8 = ts8 + _fold_rows8(vm)
        tc8 = tc8 + _fold_rows8((vm > 0.0).astype(jnp.float32))
        return ts8, tc8

    # Positives only range over real rows; padded candidates/anchors are handled
    # by the masks folded into d_an / the gate.
    ts8, tc8 = lax.fori_loop(0, n_real, body, (zeros8, zeros8), unroll=unroll)
    tsum_acc[...] += ts8
    tcnt_acc[...] += tc8

    @pl.when(i == pl.num_programs(0) - 1)
    def _finalize():
        ce_sum = _sum_all_2d(ce_acc[...])                                 # (1, 1)
        tsum = _sum_all_2d(tsum_acc[...])
        tcnt = _sum_all_2d(tcnt_acc[...])
        metric = jnp.where(tcnt > 0.0, tsum / jnp.maximum(tcnt, 1.0), 0.0)
        out_ref[...] = (lam1 * metric
                        + lam2 * ce_sum * (1.0 / float(n_real))).astype(out_ref.dtype)


def metric_loss(logits, labels, lambda_1, lambda_2, *, margin=0.05, anchor_tile=None):
    n, c = logits.shape
    logits = logits.astype(jnp.float32)
    labels = labels.astype(jnp.int32)

    # ---- anchor tiling: anchors land on the LANE axis of the transposed distance
    # matrix, so multi-step tiles must be lane-dense (multiples of 128).  Small
    # problems run as a single grid step (per-step overhead dominates tiny tiles).
    if anchor_tile is None:
        anchor_tile = n if n <= 1024 else 256
    if anchor_tile >= n:
        tile_t = _round_up(n, 8)
        n_pad = tile_t
    else:
        if anchor_tile % 128 != 0:
            raise ValueError("multi-step anchor tiles must be a multiple of 128")
        tile_t = anchor_tile
        n_pad = _round_up(n, tile_t)
    grid = (n_pad // tile_t,)

    pad = n_pad - n
    if pad:
        logits_p = jnp.pad(logits, ((0, pad), (0, 0)))
        labels_p = jnp.pad(labels, (0, pad), constant_values=-1)   # sentinel: never a real class
    else:
        logits_p, labels_p = logits, labels

    # L2-normalized embeddings computed once in the wrapper (HBM-trivial) so the
    # kernel keeps a single resident (n_pad, C) copy instead of raw logits + xn.
    sq = jnp.sum(logits_p * logits_p, axis=1, keepdims=True)
    xn = logits_p * lax.rsqrt(jnp.maximum(sq, 1e-24))              # matches F.normalize(eps=1e-12)

    labels_row = labels_p.reshape(1, n_pad)                        # lane layout (anchor tiles)
    labels_col = labels_p.reshape(n_pad, 1)                        # sublane layout (candidates)

    unroll = True if n <= 64 else 8

    kernel = functools.partial(
        _metric_loss_kernel,
        n_pad=n_pad, n_real=n, num_classes=c, tile_t=tile_t,
        margin=float(margin), lam1=float(lambda_1), lam2=float(lambda_2),
        unroll=unroll)

    # VMEM budget (f32 bytes): resident xn (x2 buffers), streamed logits tile (x2),
    # two (n_pad, tile_t) distance scratches, small accumulators.
    est = 4 * (2 * n_pad * c + 2 * tile_t * c + 2 * n_pad * tile_t
               + 2 * 8 * tile_t + tile_t + 4 * n_pad)
    vmem_limit = None
    if est > 12 * 1024 * 1024:
        # TODO(synk): on v7x (64 MiB physical) also shrink tile_t when 2*est > ~56 MiB.
        vmem_limit = min(2 * est, 110 * 1024 * 1024)

    out = pl.pallas_call(
        kernel,
        out_shape=jax.ShapeDtypeStruct((1, 1), jnp.float32),
        grid_spec=pltpu.PrefetchScalarGridSpec(
            num_scalar_prefetch=1,                                  # labels -> SMEM scalar lookups
            grid=grid,
            in_specs=[
                pl.BlockSpec((1, tile_t), lambda i, lbl: (0, i)),   # anchor labels (lane layout)
                pl.BlockSpec((n_pad, 1), lambda i, lbl: (0, 0)),    # all labels (sublane), resident
                pl.BlockSpec((n_pad, c), lambda i, lbl: (0, 0)),    # normalized embeddings, resident
                pl.BlockSpec((tile_t, c), lambda i, lbl: (i, 0)),   # raw logits of this anchor tile
            ],
            out_specs=pl.BlockSpec((1, 1), lambda i, lbl: (0, 0)),  # resident scalar output
            scratch_shapes=[
                pltpu.VMEM((n_pad, tile_t), jnp.float32),   # raw distances d(a, .)
                pltpu.VMEM((n_pad, tile_t), jnp.float32),   # masked distances (+BIG if invalid negative)
                pltpu.VMEM((tile_t, 1), jnp.float32),       # per-row CE partials
                pltpu.VMEM((8, tile_t), jnp.float32),       # triplet-loss partial sums (sublane-folded)
                pltpu.VMEM((8, tile_t), jnp.float32),       # nonzero-triplet partial counts
            ],
        ),
        compiler_params=pltpu.CompilerParams(
            dimension_semantics=("arbitrary",),             # anchor axis is a reduction
            vmem_limit_bytes=vmem_limit),
    )(labels_p, labels_row, labels_col, xn, logits_p)
    return out[0, 0]


def _reference_metric_loss(logits, labels, lambda_1, lambda_2, margin=0.05):
    """Pure-JAX reference of the PyTorch MetricLoss semantics."""
    logits = logits.astype(jnp.float32)
    n = logits.shape[0]
    # CrossEntropyLoss (mean reduction)
    m = jnp.max(logits, axis=1)
    lse = m + jnp.log(jnp.sum(jnp.exp(logits - m[:, None]), axis=1))
    ce = jnp.mean(lse - logits[jnp.arange(n), labels])
    # TripletMarginLoss, pytorch-metric-learning defaults
    xn = logits / jnp.maximum(jnp.linalg.norm(logits, axis=1, keepdims=True), 1e-12)
    diff = xn[:, None, :] - xn[None, :, :]
    dist = jnp.sqrt(jnp.maximum(jnp.sum(diff * diff, axis=-1), 0.0))
    same = labels[:, None] == labels[None, :]
    idx = jnp.arange(n)
    pos = same & (idx[:, None] != idx[None, :])
    neg = ~same
    viol = jnp.maximum(dist[:, :, None] - dist[:, None, :] + margin, 0.0)  # (a, p, n)
    valid = pos[:, :, None] & neg[:, None, :]
    tsum = jnp.sum(jnp.where(valid, viol, 0.0))
    tcnt = jnp.sum(jnp.where(valid & (viol > 0.0), 1.0, 0.0))
    metric = jnp.where(tcnt > 0.0, tsum / jnp.maximum(tcnt, 1.0), 0.0)
    return lambda_1 * metric + lambda_2 * ce


if __name__ == "__main__":
    key = jax.random.PRNGKey(0)
    k1, k2, k3 = jax.random.split(key, 3)
    lambda_1, lambda_2 = 1.0, 0.5

    # 1) small single-step problem (logits double as embeddings)
    n, c = 16, 8
    logits = jax.random.normal(k1, (n, c), dtype=jnp.float32)
    labels = jnp.arange(n, dtype=jnp.int32) % 4          # guarantees positives and negatives
    loss = jax.block_until_ready(metric_loss(logits, labels, lambda_1, lambda_2))
    ref = _reference_metric_loss(logits, labels, lambda_1, lambda_2)
    assert loss.shape == ()
    assert bool(jnp.isfinite(loss))
    assert jnp.allclose(loss, ref, rtol=1e-3, atol=1e-3), (loss, ref)

    # 2) batch not a multiple of 8 -> exercises the padding / masking path
    n2 = 20
    logits2 = jax.random.normal(k2, (n2, c), dtype=jnp.float32)
    labels2 = jnp.arange(n2, dtype=jnp.int32) % 5
    loss2 = jax.block_until_ready(metric_loss(logits2, labels2, lambda_1, lambda_2))
    ref2 = _reference_metric_loss(logits2, labels2, lambda_1, lambda_2)
    assert jnp.allclose(loss2, ref2, rtol=1e-3, atol=1e-3), (loss2, ref2)

    # 3) multi-step (lane-dense 128-anchor tiles) accumulation path
    n3 = 256
    logits3 = jax.random.normal(k3, (n3, c), dtype=jnp.float32)
    labels3 = jnp.arange(n3, dtype=jnp.int32) % 7
    loss3 = jax.block_until_ready(
        metric_loss(logits3, labels3, lambda_1, lambda_2, anchor_tile=128))
    ref3 = _reference_metric_loss(logits3, labels3, lambda_1, lambda_2)
    assert jnp.allclose(loss3, ref3, rtol=1e-3, atol=1e-3), (loss3, ref3)

    print("KERNEL_OK")
</pallas_src>

<mosaic_0001>
module attributes {stable_mosaic.version = 11 : i64} {
  func.func @_metric_loss_kernel(%arg0: i32, %arg1: memref<16xi32, #tpu.memory_space<smem>>, %arg2: memref<1x16xi32, #tpu.memory_space<vmem>>, %arg3: memref<16x1xi32, #tpu.memory_space<vmem>>, %arg4: memref<16x8xf32, #tpu.memory_space<vmem>>, %arg5: memref<16x8xf32, #tpu.memory_space<vmem>>, %arg6: memref<1x1xf32, #tpu.memory_space<vmem>>, %arg7: memref<16x16xf32, #tpu.memory_space<vmem>>, %arg8: memref<16x16xf32, #tpu.memory_space<vmem>>, %arg9: memref<16x1xf32, #tpu.memory_space<vmem>>, %arg10: memref<8x16xf32, #tpu.memory_space<vmem>>, %arg11: memref<8x16xf32, #tpu.memory_space<vmem>>) attributes {dimension_semantics = [#tpu.dimension_semantics<arbitrary>], iteration_bounds = array<i64: 1>, scalar_prefetch = 1 : i64, scratch_operands = 5 : i64, tpu.core_type = #tpu.core_type<tc>, window_params = [{transform_indices = @transform_0, window_bounds = array<i64: 1, 16>}, {pipeline_mode = #tpu.pipeline_mode<synchronous>, transform_indices = @transform_1, window_bounds = array<i64: 16, 1>}, {pipeline_mode = #tpu.pipeline_mode<synchronous>, transform_indices = @transform_2, window_bounds = array<i64: 16, 8>}, {transform_indices = @transform_3, window_bounds = array<i64: 16, 8>}, {pipeline_mode = #tpu.pipeline_mode<synchronous>, transform_indices = @transform_4, window_bounds = array<i64: 1, 1>}]} {
    %c16_i32 = arith.constant 16 : i32
    %0 = arith.muli %arg0, %c16_i32 : i32
    %1 = tpu.assume_multiple %0, 16 : i32
    %c0_i32 = arith.constant 0 : i32
    %2 = arith.cmpi eq, %arg0, %c0_i32 : i32
    %3 = arith.extui %2 : i1 to i32
    %c0_i32_0 = arith.constant 0 : i32
    %4 = arith.cmpi ne, %3, %c0_i32_0 : i32
    scf.if %4 {
      %cst_154 = arith.constant 0.000000e+00 : f32
      %554 = vector.broadcast %cst_154 : f32 to vector<16x1xf32>
      %c0_155 = arith.constant 0 : index
      %c0_156 = arith.constant 0 : index
      %555 = vector.load %arg9[%c0_155, %c0_156] : memref<16x1xf32, #tpu.memory_space<vmem>>, vector<16x1xf32>
      tpu.vector_store %arg9[%c0_155, %c0_156], %554 {strides = array<i32>} : memref<16x1xf32, #tpu.memory_space<vmem>>, vector<16x1xf32>,
      %cst_157 = arith.constant 0.000000e+00 : f32
      %556 = vector.broadcast %cst_157 : f32 to vector<8x16xf32>
      %c0_158 = arith.constant 0 : index
      %c0_159 = arith.constant 0 : index
      %557 = vector.load %arg10[%c0_158, %c0_159] : memref<8x16xf32, #tpu.memory_space<vmem>>, vector<8x16xf32>
      tpu.vector_store %arg10[%c0_158, %c0_159], %556 {strides = array<i32>} : memref<8x16xf32, #tpu.memory_space<vmem>>, vector<8x16xf32>,
      %cst_160 = arith.constant 0.000000e+00 : f32
      %558 = vector.broadcast %cst_160 : f32 to vector<8x16xf32>
      %c0_161 = arith.constant 0 : index
      %c0_162 = arith.constant 0 : index
      %559 = vector.load %arg11[%c0_161, %c0_162] : memref<8x16xf32, #tpu.memory_space<vmem>>, vector<8x16xf32>
      tpu.vector_store %arg11[%c0_161, %c0_162], %558 {strides = array<i32>} : memref<8x16xf32, #tpu.memory_space<vmem>>, vector<8x16xf32>,
    } else {
    }
    %c0 = arith.constant 0 : index
    %c0_1 = arith.constant 0 : index
    %5 = vector.load %arg5[%c0, %c0_1] : memref<16x8xf32, #tpu.memory_space<vmem>>, vector<16x8xf32>
    %6 = arith.index_cast %1 : i32 to index
    %c0_2 = arith.constant 0 : index
    %7 = vector.load %arg3[%6, %c0_2] : memref<16x1xi32, #tpu.memory_space<vmem>>, vector<16x1xi32>
    %cst = arith.constant dense<0xFF800000> : vector<16xf32>
    %8 = vector.multi_reduction <maximumf>, %5, %cst [1] : vector<16x8xf32> to vector<16xf32>
    %9 = vector.shape_cast %8 : vector<16xf32> to vector<16x1xf32>
    %10 = vector.broadcast %9 : vector<16x1xf32> to vector<16x8xf32>
    %11 = arith.subf %5, %10 : vector<16x8xf32>
    %12 = math.exp %11 : vector<16x8xf32>
    %cst_3 = arith.constant dense<0.000000e+00> : vector<16xf32>
    %13 = vector.multi_reduction <add>, %12, %cst_3 [1] : vector<16x8xf32> to vector<16xf32>
    %14 = vector.shape_cast %13 : vector<16xf32> to vector<16x1xf32>
    %15 = math.log %14 : vector<16x1xf32>
    %16 = arith.addf %9, %15 : vector<16x1xf32>
    %17 = tpu.iota {dimensions = array<i32: 1>} : vector<16x8xi32>
    %18 = vector.broadcast %7 : vector<16x1xi32> to vector<16x8xi32>
    %19 = arith.cmpi eq, %17, %18 : vector<16x8xi32>
    %cst_4 = arith.constant 0.000000e+00 : f32
    %20 = vector.broadcast %cst_4 : f32 to vector<16x8xf32>
    %21 = arith.select %19, %5, %20 : vector<16x8xi1>, vector<16x8xf32>
    %cst_5 = arith.constant dense<0.000000e+00> : vector<16xf32>
    %22 = vector.multi_reduction <add>, %21, %cst_5 [1] : vector<16x8xf32> to vector<16xf32>
    %23 = vector.shape_cast %22 : vector<16xf32> to vector<16x1xf32>
    %c0_i32_6 = arith.constant 0 : i32
    %24 = vector.broadcast %c0_i32_6 : i32 to vector<16x1xi32>
    %25 = arith.cmpi sge, %7, %24 : vector<16x1xi32>
    %26 = arith.extui %25 : vector<16x1xi1> to vector<16x1xi32>
    %27 = arith.sitofp %26 : vector<16x1xi32> to vector<16x1xf32>
    %c0_7 = arith.constant 0 : index
    %c0_8 = arith.constant 0 : index
    %28 = vector.load %arg9[%c0_7, %c0_8] : memref<16x1xf32, #tpu.memory_space<vmem>>, vector<16x1xf32>
    %29 = arith.subf %16, %23 : vector<16x1xf32>
    %30 = arith.mulf %29, %27 : vector<16x1xf32>
    %31 = arith.addf %28, %30 : vector<16x1xf32>
    %c0_9 = arith.constant 0 : index
    %c0_10 = arith.constant 0 : index
    %32 = vector.load %arg9[%c0_9, %c0_10] : memref<16x1xf32, #tpu.memory_space<vmem>>, vector<16x1xf32>
    tpu.vector_store %arg9[%c0_9, %c0_10], %31 {strides = array<i32>} : memref<16x1xf32, #tpu.memory_space<vmem>>, vector<16x1xf32>,
    %33 = arith.index_cast %1 : i32 to index
    %c0_11 = arith.constant 0 : index
    %34 = vector.load %arg4[%33, %c0_11] : memref<16x8xf32, #tpu.memory_space<vmem>>, vector<16x8xf32>
    %c0_12 = arith.constant 0 : index
    %c0_13 = arith.constant 0 : index
    %35 = vector.load %arg4[%c0_12, %c0_13] : memref<16x8xf32, #tpu.memory_space<vmem>>, vector<16x8xf32>
    %cst_14 = arith.constant dense<0.000000e+00> : vector<16x16xf32>
    %36 = tpu.matmul %35, %34, %cst_14 {dimension_numbers = #tpu.dot_dimension_numbers<[1], [1], [0], [0], [0, 0, 1, 0], [], []>, precision = #tpu.contract_precision<fp32>} : vector<16x8xf32>, vector<16x8xf32>, vector<16x16xf32> -> vector<16x16xf32>
    %cst_15 = arith.constant 2.000000e+00 : f32
    %37 = vector.broadcast %cst_15 : f32 to vector<16x16xf32>
    %38 = arith.mulf %37, %36 : vector<16x16xf32>
    %cst_16 = arith.constant 2.000000e+00 : f32
    %39 = vector.broadcast %cst_16 : f32 to vector<16x16xf32>
    %40 = arith.subf %39, %38 : vector<16x16xf32>
    %cst_17 = arith.constant 0.000000e+00 : f32
    %41 = vector.broadcast %cst_17 : f32 to vector<16x16xf32>
    %42 = arith.maximumf %40, %41 : vector<16x16xf32>
    %43 = math.sqrt %42 : vector<16x16xf32>
    %c0_18 = arith.constant 0 : index
    %c0_19 = arith.constant 0 : index
    %44 = vector.load %arg7[%c0_18, %c0_19] : memref<16x16xf32, #tpu.memory_space<vmem>>, vector<16x16xf32>
    tpu.vector_store %arg7[%c0_18, %c0_19], %43 {strides = array<i32>} : memref<16x16xf32, #tpu.memory_space<vmem>>, vector<16x16xf32>,
    %c0_20 = arith.constant 0 : index
    %c0_21 = arith.constant 0 : index
    %45 = vector.load %arg2[%c0_20, %c0_21] : memref<1x16xi32, #tpu.memory_space<vmem>>, vector<1x16xi32>
    %c0_22 = arith.constant 0 : index
    %c0_23 = arith.constant 0 : index
    %46 = vector.load %arg3[%c0_22, %c0_23] : memref<16x1xi32, #tpu.memory_space<vmem>>, vector<16x1xi32>
    %47 = vector.broadcast %46 : vector<16x1xi32> to vector<16x16xi32>
    %48 = vector.broadcast %45 : vector<1x16xi32> to vector<16x16xi32>
    %49 = arith.cmpi eq, %47, %48 : vector<16x16xi32>
    %c0_i32_24 = arith.constant 0 : i32
    %50 = vector.broadcast %c0_i32_24 : i32 to vector<16x1xi32>
    %51 = arith.cmpi slt, %46, %50 : vector<16x1xi32>
    %52 = vector.broadcast %51 : vector<16x1xi1> to vector<16x16xi1>
    %53 = arith.ori %49, %52 : vector<16x16xi1>
    %c0_i32_25 = arith.constant 0 : i32
    %54 = vector.broadcast %c0_i32_25 : i32 to vector<1x16xi32>
    %55 = arith.cmpi slt, %45, %54 : vector<1x16xi32>
    %56 = vector.broadcast %55 : vector<1x16xi1> to vector<16x16xi1>
    %57 = arith.ori %53, %56 : vector<16x16xi1>
    %cst_26 = arith.constant 1.000000e+09 : f32
    %58 = vector.broadcast %cst_26 : f32 to vector<16x16xf32>
    %59 = arith.select %57, %58, %43 : vector<16x16xi1>, vector<16x16xf32>
    %c0_27 = arith.constant 0 : index
    %c0_28 = arith.constant 0 : index
    %60 = vector.load %arg8[%c0_27, %c0_28] : memref<16x16xf32, #tpu.memory_space<vmem>>, vector<16x16xf32>
    tpu.vector_store %arg8[%c0_27, %c0_28], %59 {strides = array<i32>} : memref<16x16xf32, #tpu.memory_space<vmem>>, vector<16x16xf32>,
    %61 = tpu.iota {dimensions = array<i32: 1>} : vector<1x16xi32>
    %62 = vector.broadcast %1 : i32 to vector<1x16xi32>
    %63 = arith.addi %62, %61 : vector<1x16xi32>
    %cst_29 = arith.constant 0.000000e+00 : f32
    %64 = vector.broadcast %cst_29 : f32 to vector<8x16xf32>
    %c0_i32_30 = arith.constant 0 : i32
    %65 = arith.index_cast %c0_i32_30 : i32 to index
    %66 = memref.load %arg1[%65] : memref<16xi32, #tpu.memory_space<smem>>
    %67 = vector.broadcast %66 : i32 to vector<1x16xi32>
    %68 = arith.cmpi eq, %45, %67 : vector<1x16xi32>
    %69 = vector.broadcast %c0_i32_30 : i32 to vector<1x16xi32>
    %70 = arith.cmpi ne, %63, %69 : vector<1x16xi32>
    %71 = arith.andi %68, %70 : vector<1x16xi1>
    %72 = arith.index_cast %c0_i32_30 : i32 to index
    %c0_31 = arith.constant 0 : index
    %73 = vector.load %arg7[%72, %c0_31] : memref<16x16xf32, #tpu.memory_space<vmem>>, vector<1x16xf32>
    %cst_32 = arith.constant 5.000000e-02 : f32
    %74 = vector.broadcast %cst_32 : f32 to vector<1x16xf32>
    %75 = arith.addf %73, %74 : vector<1x16xf32>
    %cst_33 = arith.constant -1.000000e+09 : f32
    %76 = vector.broadcast %cst_33 : f32 to vector<1x16xf32>
    %77 = arith.select %71, %75, %76 : vector<1x16xi1>, vector<1x16xf32>
    %c0_34 = arith.constant 0 : index
    %c0_35 = arith.constant 0 : index
    %78 = vector.load %arg8[%c0_34, %c0_35] : memref<16x16xf32, #tpu.memory_space<vmem>>, vector<16x16xf32>
    %79 = vector.broadcast %77 : vector<1x16xf32> to vector<16x16xf32>
    %80 = arith.subf %79, %78 : vector<16x16xf32>
    %cst_36 = arith.constant 0.000000e+00 : f32
    %81 = vector.broadcast %cst_36 : f32 to vector<16x16xf32>
    %82 = arith.maximumf %80, %81 : vector<16x16xf32>
    %83 = vector.extract_strided_slice %82 {offsets = [0, 0], sizes = [8, 16], strides = [1, 1]} : vector<16x16xf32> to vector<8x16xf32>
    %84 = vector.extract_strided_slice %82 {offsets = [8, 0], sizes = [8, 16], strides = [1, 1]} : vector<16x16xf32> to vector<8x16xf32>
    %85 = arith.addf %83, %84 : vector<8x16xf32>
    %86 = arith.addf %64, %85 : vector<8x16xf32>
    %cst_37 = arith.constant 0.000000e+00 : f32
    %87 = vector.broadcast %cst_37 : f32 to vector<16x16xf32>
    %88 = arith.cmpf ogt, %82, %87 : vector<16x16xf32>
    %89 = arith.extui %88 : vector<16x16xi1> to vector<16x16xi32>
    %90 = arith.sitofp %89 : vector<16x16xi32> to vector<16x16xf32>
    %91 = vector.extract_strided_slice %90 {offsets = [0, 0], sizes = [8, 16], strides = [1, 1]} : vector<16x16xf32> to vector<8x16xf32>
    %92 = vector.extract_strided_slice %90 {offsets = [8, 0], sizes = [8, 16], strides = [1, 1]} : vector<16x16xf32> to vector<8x16xf32>
    %93 = arith.addf %91, %92 : vector<8x16xf32>
    %94 = arith.addf %64, %93 : vector<8x16xf32>
    %c1_i32 = arith.constant 1 : i32
    %95 = arith.index_cast %c1_i32 : i32 to index
    %96 = memref.load %arg1[%95] : memref<16xi32, #tpu.memory_space<smem>>
    %97 = vector.broadcast %96 : i32 to vector<1x16xi32>
    %98 = arith.cmpi eq, %45, %97 : vector<1x16xi32>
    %99 = vector.broadcast %c1_i32 : i32 to vector<1x16xi32>
    %100 = arith.cmpi ne, %63, %99 : vector<1x16xi32>
    %101 = arith.andi %98, %100 : vector<1x16xi1>
    %102 = arith.index_cast %c1_i32 : i32 to index
    %c0_38 = arith.constant 0 : index
    %103 = vector.load %arg7[%102, %c0_38] : memref<16x16xf32, #tpu.memory_space<vmem>>, vector<1x16xf32>
    %cst_39 = arith.constant 5.000000e-02 : f32
    %104 = vector.broadcast %cst_39 : f32 to vector<1x16xf32>
    %105 = arith.addf %103, %104 : vector<1x16xf32>
    %cst_40 = arith.constant -1.000000e+09 : f32
    %106 = vector.broadcast %cst_40 : f32 to vector<1x16xf32>
    %107 = arith.select %101, %105, %106 : vector<1x16xi1>, vector<1x16xf32>
    %c0_41 = arith.constant 0 : index
    %c0_42 = arith.constant 0 : index
    %108 = vector.load %arg8[%c0_41, %c0_42] : memref<16x16xf32, #tpu.memory_space<vmem>>, vector<16x16xf32>
    %109 = vector.broadcast %107 : vector<1x16xf32> to vector<16x16xf32>
    %110 = arith.subf %109, %108 : vector<16x16xf32>
    %cst_43 = arith.constant 0.000000e+00 : f32
    %111 = vector.broadcast %cst_43 : f32 to vector<16x16xf32>
    %112 = arith.maximumf %110, %111 : vector<16x16xf32>
    %113 = vector.extract_strided_slice %112 {offsets = [0, 0], sizes = [8, 16], strides = [1, 1]} : vector<16x16xf32> to vector<8x16xf32>
    %114 = vector.extract_strided_slice %112 {offsets = [8, 0], sizes = [8, 16], strides = [1, 1]} : vector<16x16xf32> to vector<8x16xf32>
    %115 = arith.addf %113, %114 : vector<8x16xf32>
    %116 = arith.addf %86, %115 : vector<8x16xf32>
    %cst_44 = arith.constant 0.000000e+00 : f32
    %117 = vector.broadcast %cst_44 : f32 to vector<16x16xf32>
    %118 = arith.cmpf ogt, %112, %117 : vector<16x16xf32>
    %119 = arith.extui %118 : vector<16x16xi1> to vector<16x16xi32>
    %120 = arith.sitofp %119 : vector<16x16xi32> to vector<16x16xf32>
    %121 = vector.extract_strided_slice %120 {offsets = [0, 0], sizes = [8, 16], strides = [1, 1]} : vector<16x16xf32> to vector<8x16xf32>
    %122 = vector.extract_strided_slice %120 {offsets = [8, 0], sizes = [8, 16], strides = [1, 1]} : vector<16x16xf32> to vector<8x16xf32>
    %123 = arith.addf %121, %122 : vector<8x16xf32>
    %124 = arith.addf %94, %123 : vector<8x16xf32>
    %c2_i32 = arith.constant 2 : i32
    %125 = arith.index_cast %c2_i32 : i32 to index
    %126 = memref.load %arg1[%125] : memref<16xi32, #tpu.memory_space<smem>>
    %127 = vector.broadcast %126 : i32 to vector<1x16xi32>
    %128 = arith.cmpi eq, %45, %127 : vector<1x16xi32>
    %129 = vector.broadcast %c2_i32 : i32 to vector<1x16xi32>
    %130 = arith.cmpi ne, %63, %129 : vector<1x16xi32>
    %131 = arith.andi %128, %130 : vector<1x16xi1>
    %132 = arith.index_cast %c2_i32 : i32 to index
    %c0_45 = arith.constant 0 : index
    %133 = vector.load %arg7[%132, %c0_45] : memref<16x16xf32, #tpu.memory_space<vmem>>, vector<1x16xf32>
    %cst_46 = arith.constant 5.000000e-02 : f32
    %134 = vector.broadcast %cst_46 : f32 to vector<1x16xf32>
    %135 = arith.addf %133, %134 : vector<1x16xf32>
    %cst_47 = arith.constant -1.000000e+09 : f32
    %136 = vector.broadcast %cst_47 : f32 to vector<1x16xf32>
    %137 = arith.select %131, %135, %136 : vector<1x16xi1>, vector<1x16xf32>
    %c0_48 = arith.constant 0 : index
    %c0_49 = arith.constant 0 : index
    %138 = vector.load %arg8[%c0_48, %c0_49] : memref<16x16xf32, #tpu.memory_space<vmem>>, vector<16x16xf32>
    %139 = vector.broadcast %137 : vector<1x16xf32> to vector<16x16xf32>
    %140 = arith.subf %139, %138 : vector<16x16xf32>
    %cst_50 = arith.constant 0.000000e+00 : f32
    %141 = vector.broadcast %cst_50 : f32 to vector<16x16xf32>
    %142 = arith.maximumf %140, %141 : vector<16x16xf32>
    %143 = vector.extract_strided_slice %142 {offsets = [0, 0], sizes = [8, 16], strides = [1, 1]} : vector<16x16xf32> to vector<8x16xf32>
    %144 = vector.extract_strided_slice %142 {offsets = [8, 0], sizes = [8, 16], strides = [1, 1]} : vector<16x16xf32> to vector<8x16xf32>
    %145 = arith.addf %143, %144 : vector<8x16xf32>
    %146 = arith.addf %116, %145 : vector<8x16xf32>
    %cst_51 = arith.constant 0.000000e+00 : f32
    %147 = vector.broadcast %cst_51 : f32 to vector<16x16xf32>
    %148 = arith.cmpf ogt, %142, %147 : vector<16x16xf32>
    %149 = arith.extui %148 : vector<16x16xi1> to vector<16x16xi32>
    %150 = arith.sitofp %149 : vector<16x16xi32> to vector<16x16xf32>
    %151 = vector.extract_strided_slice %150 {offsets = [0, 0], sizes = [8, 16], strides = [1, 1]} : vector<16x16xf32> to vector<8x16xf32>
    %152 = vector.extract_strided_slice %150 {offsets = [8, 0], sizes = [8, 16], strides = [1, 1]} : vector<16x16xf32> to vector<8x16xf32>
    %153 = arith.addf %151, %152 : vector<8x16xf32>
    %154 = arith.addf %124, %153 : vector<8x16xf32>
    %c3_i32 = arith.constant 3 : i32
    %155 = arith.index_cast %c3_i32 : i32 to index
    %156 = memref.load %arg1[%155] : memref<16xi32, #tpu.memory_space<smem>>
    %157 = vector.broadcast %156 : i32 to vector<1x16xi32>
    %158 = arith.cmpi eq, %45, %157 : vector<1x16xi32>
    %159 = vector.broadcast %c3_i32 : i32 to vector<1x16xi32>
    %160 = arith.cmpi ne, %63, %159 : vector<1x16xi32>
    %161 = arith.andi %158, %160 : vector<1x16xi1>
    %162 = arith.index_cast %c3_i32 : i32 to index
    %c0_52 = arith.constant 0 : index
    %163 = vector.load %arg7[%162, %c0_52] : memref<16x16xf32, #tpu.memory_space<vmem>>, vector<1x16xf32>
    %cst_53 = arith.constant 5.000000e-02 : f32
    %164 = vector.broadcast %cst_53 : f32 to vector<1x16xf32>
    %165 = arith.addf %163, %164 : vector<1x16xf32>
    %cst_54 = arith.constant -1.000000e+09 : f32
    %166 = vector.broadcast %cst_54 : f32 to vector<1x16xf32>
    %167 = arith.select %161, %165, %166 : vector<1x16xi1>, vector<1x16xf32>
    %c0_55 = arith.constant 0 : index
    %c0_56 = arith.constant 0 : index
    %168 = vector.load %arg8[%c0_55, %c0_56] : memref<16x16xf32, #tpu.memory_space<vmem>>, vector<16x16xf32>
    %169 = vector.broadcast %167 : vector<1x16xf32> to vector<16x16xf32>
    %170 = arith.subf %169, %168 : vector<16x16xf32>
    %cst_57 = arith.constant 0.000000e+00 : f32
    %171 = vector.broadcast %cst_57 : f32 to vector<16x16xf32>
    %172 = arith.maximumf %170, %171 : vector<16x16xf32>
    %173 = vector.extract_strided_slice %172 {offsets = [0, 0], sizes = [8, 16], strides = [1, 1]} : vector<16x16xf32> to vector<8x16xf32>
    %174 = vector.extract_strided_slice %172 {offsets = [8, 0], sizes = [8, 16], strides = [1, 1]} : vector<16x16xf32> to vector<8x16xf32>
    %175 = arith.addf %173, %174 : vector<8x16xf32>
    %176 = arith.addf %146, %175 : vector<8x16xf32>
    %cst_58 = arith.constant 0.000000e+00 : f32
    %177 = vector.broadcast %cst_58 : f32 to vector<16x16xf32>
    %178 = arith.cmpf ogt, %172, %177 : vector<16x16xf32>
    %179 = arith.extui %178 : vector<16x16xi1> to vector<16x16xi32>
    %180 = arith.sitofp %179 : vector<16x16xi32> to vector<16x16xf32>
    %181 = vector.extract_strided_slice %180 {offsets = [0, 0], sizes = [8, 16], strides = [1, 1]} : vector<16x16xf32> to vector<8x16xf32>
    %182 = vector.extract_strided_slice %180 {offsets = [8, 0], sizes = [8, 16], strides = [1, 1]} : vector<16x16xf32> to vector<8x16xf32>
    %183 = arith.addf %181, %182 : vector<8x16xf32>
    %184 = arith.addf %154, %183 : vector<8x16xf32>
    %c4_i32 = arith.constant 4 : i32
    %185 = arith.index_cast %c4_i32 : i32 to index
    %186 = memref.load %arg1[%185] : memref<16xi32, #tpu.memory_space<smem>>
    %187 = vector.broadcast %186 : i32 to vector<1x16xi32>
    %188 = arith.cmpi eq, %45, %187 : vector<1x16xi32>
    %189 = vector.broadcast %c4_i32 : i32 to vector<1x16xi32>
    %190 = arith.cmpi ne, %63, %189 : vector<1x16xi32>
    %191 = arith.andi %188, %190 : vector<1x16xi1>
    %192 = arith.index_cast %c4_i32 : i32 to index
    %c0_59 = arith.constant 0 : index
    %193 = vector.load %arg7[%192, %c0_59] : memref<16x16xf32, #tpu.memory_space<vmem>>, vector<1x16xf32>
    %cst_60 = arith.constant 5.000000e-02 : f32
    %194 = vector.broadcast %cst_60 : f32 to vector<1x16xf32>
    %195 = arith.addf %193, %194 : vector<1x16xf32>
    %cst_61 = arith.constant -1.000000e+09 : f32
    %196 = vector.broadcast %cst_61 : f32 to vector<1x16xf32>
    %197 = arith.select %191, %195, %196 : vector<1x16xi1>, vector<1x16xf32>
    %c0_62 = arith.constant 0 : index
    %c0_63 = arith.constant 0 : index
    %198 = vector.load %arg8[%c0_62, %c0_63] : memref<16x16xf32, #tpu.memory_space<vmem>>, vector<16x16xf32>
    %199 = vector.broadcast %197 : vector<1x16xf32> to vector<16x16xf32>
    %200 = arith.subf %199, %198 : vector<16x16xf32>
    %cst_64 = arith.constant 0.000000e+00 : f32
    %201 = vector.broadcast %cst_64 : f32 to vector<16x16xf32>
    %202 = arith.maximumf %200, %201 : vector<16x16xf32>
    %203 = vector.extract_strided_slice %202 {offsets = [0, 0], sizes = [8, 16], strides = [1, 1]} : vector<16x16xf32> to vector<8x16xf32>
    %204 = vector.extract_strided_slice %202 {offsets = [8, 0], sizes = [8, 16], strides = [1, 1]} : vector<16x16xf32> to vector<8x16xf32>
    %205 = arith.addf %203, %204 : vector<8x16xf32>
    %206 = arith.addf %176, %205 : vector<8x16xf32>
    %cst_65 = arith.constant 0.000000e+00 : f32
    %207 = vector.broadcast %cst_65 : f32 to vector<16x16xf32>
    %208 = arith.cmpf ogt, %202, %207 : vector<16x16xf32>
    %209 = arith.extui %208 : vector<16x16xi1> to vector<16x16xi32>
    %210 = arith.sitofp %209 : vector<16x16xi32> to vector<16x16xf32>
    %211 = vector.extract_strided_slice %210 {offsets = [0, 0], sizes = [8, 16], strides = [1, 1]} : vector<16x16xf32> to vector<8x16xf32>
    %212 = vector.extract_strided_slice %210 {offsets = [8, 0], sizes = [8, 16], strides = [1, 1]} : vector<16x16xf32> to vector<8x16xf32>
    %213 = arith.addf %211, %212 : vector<8x16xf32>
    %214 = arith.addf %184, %213 : vector<8x16xf32>
    %c5_i32 = arith.constant 5 : i32
    %215 = arith.index_cast %c5_i32 : i32 to index
    %216 = memref.load %arg1[%215] : memref<16xi32, #tpu.memory_space<smem>>
    %217 = vector.broadcast %216 : i32 to vector<1x16xi32>
    %218 = arith.cmpi eq, %45, %217 : vector<1x16xi32>
    %219 = vector.broadcast %c5_i32 : i32 to vector<1x16xi32>
    %220 = arith.cmpi ne, %63, %219 : vector<1x16xi32>
    %221 = arith.andi %218, %220 : vector<1x16xi1>
    %222 = arith.index_cast %c5_i32 : i32 to index
    %c0_66 = arith.constant 0 : index
    %223 = vector.load %arg7[%222, %c0_66] : memref<16x16xf32, #tpu.memory_space<vmem>>, vector<1x16xf32>
    %cst_67 = arith.constant 5.000000e-02 : f32
    %224 = vector.broadcast %cst_67 : f32 to vector<1x16xf32>
    %225 = arith.addf %223, %224 : vector<1x16xf32>
    %cst_68 = arith.constant -1.000000e+09 : f32
    %226 = vector.broadcast %cst_68 : f32 to vector<1x16xf32>
    %227 = arith.select %221, %225, %226 : vector<1x16xi1>, vector<1x16xf32>
    %c0_69 = arith.constant 0 : index
    %c0_70 = arith.constant 0 : index
    %228 = vector.load %arg8[%c0_69, %c0_70] : memref<16x16xf32, #tpu.memory_space<vmem>>, vector<16x16xf32>
    %229 = vector.broadcast %227 : vector<1x16xf32> to vector<16x16xf32>
    %230 = arith.subf %229, %228 : vector<16x16xf32>
    %cst_71 = arith.constant 0.000000e+00 : f32
    %231 = vector.broadcast %cst_71 : f32 to vector<16x16xf32>
    %232 = arith.maximumf %230, %231 : vector<16x16xf32>
    %233 = vector.extract_strided_slice %232 {offsets = [0, 0], sizes = [8, 16], strides = [1, 1]} : vector<16x16xf32> to vector<8x16xf32>
    %234 = vector.extract_strided_slice %232 {offsets = [8, 0], sizes = [8, 16], strides = [1, 1]} : vector<16x16xf32> to vector<8x16xf32>
    %235 = arith.addf %233, %234 : vector<8x16xf32>
    %236 = arith.addf %206, %235 : vector<8x16xf32>
    %cst_72 = arith.constant 0.000000e+00 : f32
    %237 = vector.broadcast %cst_72 : f32 to vector<16x16xf32>
    %238 = arith.cmpf ogt, %232, %237 : vector<16x16xf32>
    %239 = arith.extui %238 : vector<16x16xi1> to vector<16x16xi32>
    %240 = arith.sitofp %239 : vector<16x16xi32> to vector<16x16xf32>
    %241 = vector.extract_strided_slice %240 {offsets = [0, 0], sizes = [8, 16], strides = [1, 1]} : vector<16x16xf32> to vector<8x16xf32>
    %242 = vector.extract_strided_slice %240 {offsets = [8, 0], sizes = [8, 16], strides = [1, 1]} : vector<16x16xf32> to vector<8x16xf32>
    %243 = arith.addf %241, %242 : vector<8x16xf32>
    %244 = arith.addf %214, %243 : vector<8x16xf32>
    %c6_i32 = arith.constant 6 : i32
    %245 = arith.index_cast %c6_i32 : i32 to index
    %246 = memref.load %arg1[%245] : memref<16xi32, #tpu.memory_space<smem>>
    %247 = vector.broadcast %246 : i32 to vector<1x16xi32>
    %248 = arith.cmpi eq, %45, %247 : vector<1x16xi32>
    %249 = vector.broadcast %c6_i32 : i32 to vector<1x16xi32>
    %250 = arith.cmpi ne, %63, %249 : vector<1x16xi32>
    %251 = arith.andi %248, %250 : vector<1x16xi1>
    %252 = arith.index_cast %c6_i32 : i32 to index
    %c0_73 = arith.constant 0 : index
    %253 = vector.load %arg7[%252, %c0_73] : memref<16x16xf32, #tpu.memory_space<vmem>>, vector<1x16xf32>
    %cst_74 = arith.constant 5.000000e-02 : f32
    %254 = vector.broadcast %cst_74 : f32 to vector<1x16xf32>
    %255 = arith.addf %253, %254 : vector<1x16xf32>
    %cst_75 = arith.constant -1.000000e+09 : f32
    %256 = vector.broadcast %cst_75 : f32 to vector<1x16xf32>
    %257 = arith.select %251, %255, %256 : vector<1x16xi1>, vector<1x16xf32>
    %c0_76 = arith.constant 0 : index
    %c0_77 = arith.constant 0 : index
    %258 = vector.load %arg8[%c0_76, %c0_77] : memref<16x16xf32, #tpu.memory_space<vmem>>, vector<16x16xf32>
    %259 = vector.broadcast %257 : vector<1x16xf32> to vector<16x16xf32>
    %260 = arith.subf %259, %258 : vector<16x16xf32>
    %cst_78 = arith.constant 0.000000e+00 : f32
    %261 = vector.broadcast %cst_78 : f32 to vector<16x16xf32>
    %262 = arith.maximumf %260, %261 : vector<16x16xf32>
    %263 = vector.extract_strided_slice %262 {offsets = [0, 0], sizes = [8, 16], strides = [1, 1]} : vector<16x16xf32> to vector<8x16xf32>
    %264 = vector.extract_strided_slice %262 {offsets = [8, 0], sizes = [8, 16], strides = [1, 1]} : vector<16x16xf32> to vector<8x16xf32>
    %265 = arith.addf %263, %264 : vector<8x16xf32>
    %266 = arith.addf %236, %265 : vector<8x16xf32>
    %cst_79 = arith.constant 0.000000e+00 : f32
    %267 = vector.broadcast %cst_79 : f32 to vector<16x16xf32>
    %268 = arith.cmpf ogt, %262, %267 : vector<16x16xf32>
    %269 = arith.extui %268 : vector<16x16xi1> to vector<16x16xi32>
    %270 = arith.sitofp %269 : vector<16x16xi32> to vector<16x16xf32>
    %271 = vector.extract_strided_slice %270 {offsets = [0, 0], sizes = [8, 16], strides = [1, 1]} : vector<16x16xf32> to vector<8x16xf32>
    %272 = vector.extract_strided_slice %270 {offsets = [8, 0], sizes = [8, 16], strides = [1, 1]} : vector<16x16xf32> to vector<8x16xf32>
    %273 = arith.addf %271, %272 : vector<8x16xf32>
    %274 = arith.addf %244, %273 : vector<8x16xf32>
    %c7_i32 = arith.constant 7 : i32
    %275 = arith.index_cast %c7_i32 : i32 to index
    %276 = memref.load %arg1[%275] : memref<16xi32, #tpu.memory_space<smem>>
    %277 = vector.broadcast %276 : i32 to vector<1x16xi32>
    %278 = arith.cmpi eq, %45, %277 : vector<1x16xi32>
    %279 = vector.broadcast %c7_i32 : i32 to vector<1x16xi32>
    %280 = arith.cmpi ne, %63, %279 : vector<1x16xi32>
    %281 = arith.andi %278, %280 : vector<1x16xi1>
    %282 = arith.index_cast %c7_i32 : i32 to index
    %c0_80 = arith.constant 0 : index
    %283 = vector.load %arg7[%282, %c0_80] : memref<16x16xf32, #tpu.memory_space<vmem>>, vector<1x16xf32>
    %cst_81 = arith.constant 5.000000e-02 : f32
    %284 = vector.broadcast %cst_81 : f32 to vector<1x16xf32>
    %285 = arith.addf %283, %284 : vector<1x16xf32>
    %cst_82 = arith.constant -1.000000e+09 : f32
    %286 = vector.broadcast %cst_82 : f32 to vector<1x16xf32>
    %287 = arith.select %281, %285, %286 : vector<1x16xi1>, vector<1x16xf32>
    %c0_83 = arith.constant 0 : index
    %c0_84 = arith.constant 0 : index
    %288 = vector.load %arg8[%c0_83, %c0_84] : memref<16x16xf32, #tpu.memory_space<vmem>>, vector<16x16xf32>
    %289 = vector.broadcast %287 : vector<1x16xf32> to vector<16x16xf32>
    %290 = arith.subf %289, %288 : vector<16x16xf32>
    %cst_85 = arith.constant 0.000000e+00 : f32
    %291 = vector.broadcast %cst_85 : f32 to vector<16x16xf32>
    %292 = arith.maximumf %290, %291 : vector<16x16xf32>
    %293 = vector.extract_strided_slice %292 {offsets = [0, 0], sizes = [8, 16], strides = [1, 1]} : vector<16x16xf32> to vector<8x16xf32>
    %294 = vector.extract_strided_slice %292 {offsets = [8, 0], sizes = [8, 16], strides = [1, 1]} : vector<16x16xf32> to vector<8x16xf32>
    %295 = arith.addf %293, %294 : vector<8x16xf32>
    %296 = arith.addf %266, %295 : vector<8x16xf32>
    %cst_86 = arith.constant 0.000000e+00 : f32
    %297 = vector.broadcast %cst_86 : f32 to vector<16x16xf32>
    %298 = arith.cmpf ogt, %292, %297 : vector<16x16xf32>
    %299 = arith.extui %298 : vector<16x16xi1> to vector<16x16xi32>
    %300 = arith.sitofp %299 : vector<16x16xi32> to vector<16x16xf32>
    %301 = vector.extract_strided_slice %300 {offsets = [0, 0], sizes = [8, 16], strides = [1, 1]} : vector<16x16xf32> to vector<8x16xf32>
    %302 = vector.extract_strided_slice %300 {offsets = [8, 0], sizes = [8, 16], strides = [1, 1]} : vector<16x16xf32> to vector<8x16xf32>
    %303 = arith.addf %301, %302 : vector<8x16xf32>
    %304 = arith.addf %274, %303 : vector<8x16xf32>
    %c8_i32 = arith.constant 8 : i32
    %305 = arith.index_cast %c8_i32 : i32 to index
    %306 = memref.load %arg1[%305] : memref<16xi32, #tpu.memory_space<smem>>
    %307 = vector.broadcast %306 : i32 to vector<1x16xi32>
    %308 = arith.cmpi eq, %45, %307 : vector<1x16xi32>
    %309 = vector.broadcast %c8_i32 : i32 to vector<1x16xi32>
    %310 = arith.cmpi ne, %63, %309 : vector<1x16xi32>
    %311 = arith.andi %308, %310 : vector<1x16xi1>
    %312 = arith.index_cast %c8_i32 : i32 to index
    %c0_87 = arith.constant 0 : index
    %313 = vector.load %arg7[%312, %c0_87] : memref<16x16xf32, #tpu.memory_space<vmem>>, vector<1x16xf32>
    %cst_88 = arith.constant 5.000000e-02 : f32
    %314 = vector.broadcast %cst_88 : f32 to vector<1x16xf32>
    %315 = arith.addf %313, %314 : vector<1x16xf32>
    %cst_89 = arith.constant -1.000000e+09 : f32
    %316 = vector.broadcast %cst_89 : f32 to vector<1x16xf32>
    %317 = arith.select %311, %315, %316 : vector<1x16xi1>, vector<1x16xf32>
    %c0_90 = arith.constant 0 : index
    %c0_91 = arith.constant 0 : index
    %318 = vector.load %arg8[%c0_90, %c0_91] : memref<16x16xf32, #tpu.memory_space<vmem>>, vector<16x16xf32>
    %319 = vector.broadcast %317 : vector<1x16xf32> to vector<16x16xf32>
    %320 = arith.subf %319, %318 : vector<16x16xf32>
    %cst_92 = arith.constant 0.000000e+00 : f32
    %321 = vector.broadcast %cst_92 : f32 to vector<16x16xf32>
    %322 = arith.maximumf %320, %321 : vector<16x16xf32>
    %323 = vector.extract_strided_slice %322 {offsets = [0, 0], sizes = [8, 16], strides = [1, 1]} : vector<16x16xf32> to vector<8x16xf32>
    %324 = vector.extract_strided_slice %322 {offsets = [8, 0], sizes = [8, 16], strides = [1, 1]} : vector<16x16xf32> to vector<8x16xf32>
    %325 = arith.addf %323, %324 : vector<8x16xf32>
    %326 = arith.addf %296, %325 : vector<8x16xf32>
    %cst_93 = arith.constant 0.000000e+00 : f32
    %327 = vector.broadcast %cst_93 : f32 to vector<16x16xf32>
    %328 = arith.cmpf ogt, %322, %327 : vector<16x16xf32>
    %329 = arith.extui %328 : vector<16x16xi1> to vector<16x16xi32>
    %330 = arith.sitofp %329 : vector<16x16xi32> to vector<16x16xf32>
    %331 = vector.extract_strided_slice %330 {offsets = [0, 0], sizes = [8, 16], strides = [1, 1]} : vector<16x16xf32> to vector<8x16xf32>
    %332 = vector.extract_strided_slice %330 {offsets = [8, 0], sizes = [8, 16], strides = [1, 1]} : vector<16x16xf32> to vector<8x16xf32>
    %333 = arith.addf %331, %332 : vector<8x16xf32>
    %334 = arith.addf %304, %333 : vector<8x16xf32>
    %c9_i32 = arith.constant 9 : i32
    %335 = arith.index_cast %c9_i32 : i32 to index
    %336 = memref.load %arg1[%335] : memref<16xi32, #tpu.memory_space<smem>>
    %337 = vector.broadcast %336 : i32 to vector<1x16xi32>
    %338 = arith.cmpi eq, %45, %337 : vector<1x16xi32>
    %339 = vector.broadcast %c9_i32 : i32 to vector<1x16xi32>
    %340 = arith.cmpi ne, %63, %339 : vector<1x16xi32>
    %341 = arith.andi %338, %340 : vector<1x16xi1>
    %342 = arith.index_cast %c9_i32 : i32 to index
    %c0_94 = arith.constant 0 : index
    %343 = vector.load %arg7[%342, %c0_94] : memref<16x16xf32, #tpu.memory_space<vmem>>, vector<1x16xf32>
    %cst_95 = arith.constant 5.000000e-02 : f32
    %344 = vector.broadcast %cst_95 : f32 to vector<1x16xf32>
    %345 = arith.addf %343, %344 : vector<1x16xf32>
    %cst_96 = arith.constant -1.000000e+09 : f32
    %346 = vector.broadcast %cst_96 : f32 to vector<1x16xf32>
    %347 = arith.select %341, %345, %346 : vector<1x16xi1>, vector<1x16xf32>
    %c0_97 = arith.constant 0 : index
    %c0_98 = arith.constant 0 : index
    %348 = vector.load %arg8[%c0_97, %c0_98] : memref<16x16xf32, #tpu.memory_space<vmem>>, vector<16x16xf32>
    %349 = vector.broadcast %347 : vector<1x16xf32> to vector<16x16xf32>
    %350 = arith.subf %349, %348 : vector<16x16xf32>
    %cst_99 = arith.constant 0.000000e+00 : f32
    %351 = vector.broadcast %cst_99 : f32 to vector<16x16xf32>
    %352 = arith.maximumf %350, %351 : vector<16x16xf32>
    %353 = vector.extract_strided_slice %352 {offsets = [0, 0], sizes = [8, 16], strides = [1, 1]} : vector<16x16xf32> to vector<8x16xf32>
    %354 = vector.extract_strided_slice %352 {offsets = [8, 0], sizes = [8, 16], strides = [1, 1]} : vector<16x16xf32> to vector<8x16xf32>
    %355 = arith.addf %353, %354 : vector<8x16xf32>
    %356 = arith.addf %326, %355 : vector<8x16xf32>
    %cst_100 = arith.constant 0.000000e+00 : f32
    %357 = vector.broadcast %cst_100 : f32 to vector<16x16xf32>
    %358 = arith.cmpf ogt, %352, %357 : vector<16x16xf32>
    %359 = arith.extui %358 : vector<16x16xi1> to vector<16x16xi32>
    %360 = arith.sitofp %359 : vector<16x16xi32> to vector<16x16xf32>
    %361 = vector.extract_strided_slice %360 {offsets = [0, 0], sizes = [8, 16], strides = [1, 1]} : vector<16x16xf32> to vector<8x16xf32>
    %362 = vector.extract_strided_slice %360 {offsets = [8, 0], sizes = [8, 16], strides = [1, 1]} : vector<16x16xf32> to vector<8x16xf32>
    %363 = arith.addf %361, %362 : vector<8x16xf32>
    %364 = arith.addf %334, %363 : vector<8x16xf32>
    %c10_i32 = arith.constant 10 : i32
    %365 = arith.index_cast %c10_i32 : i32 to index
    %366 = memref.load %arg1[%365] : memref<16xi32, #tpu.memory_space<smem>>
    %367 = vector.broadcast %366 : i32 to vector<1x16xi32>
    %368 = arith.cmpi eq, %45, %367 : vector<1x16xi32>
    %369 = vector.broadcast %c10_i32 : i32 to vector<1x16xi32>
    %370 = arith.cmpi ne, %63, %369 : vector<1x16xi32>
    %371 = arith.andi %368, %370 : vector<1x16xi1>
    %372 = arith.index_cast %c10_i32 : i32 to index
    %c0_101 = arith.constant 0 : index
    %373 = vector.load %arg7[%372, %c0_101] : memref<16x16xf32, #tpu.memory_space<vmem>>, vector<1x16xf32>
    %cst_102 = arith.constant 5.000000e-02 : f32
    %374 = vector.broadcast %cst_102 : f32 to vector<1x16xf32>
    %375 = arith.addf %373, %374 : vector<1x16xf32>
    %cst_103 = arith.constant -1.000000e+09 : f32
    %376 = vector.broadcast %cst_103 : f32 to vector<1x16xf32>
    %377 = arith.select %371, %375, %376 : vector<1x16xi1>, vector<1x16xf32>
    %c0_104 = arith.constant 0 : index
    %c0_105 = arith.constant 0 : index
    %378 = vector.load %arg8[%c0_104, %c0_105] : memref<16x16xf32, #tpu.memory_space<vmem>>, vector<16x16xf32>
    %379 = vector.broadcast %377 : vector<1x16xf32> to vector<16x16xf32>
    %380 = arith.subf %379, %378 : vector<16x16xf32>
    %cst_106 = arith.constant 0.000000e+00 : f32
    %381 = vector.broadcast %cst_106 : f32 to vector<16x16xf32>
    %382 = arith.maximumf %380, %381 : vector<16x16xf32>
    %383 = vector.extract_strided_slice %382 {offsets = [0, 0], sizes = [8, 16], strides = [1, 1]} : vector<16x16xf32> to vector<8x16xf32>
    %384 = vector.extract_strided_slice %382 {offsets = [8, 0], sizes = [8, 16], strides = [1, 1]} : vector<16x16xf32> to vector<8x16xf32>
    %385 = arith.addf %383, %384 : vector<8x16xf32>
    %386 = arith.addf %356, %385 : vector<8x16xf32>
    %cst_107 = arith.constant 0.000000e+00 : f32
    %387 = vector.broadcast %cst_107 : f32 to vector<16x16xf32>
    %388 = arith.cmpf ogt, %382, %387 : vector<16x16xf32>
    %389 = arith.extui %388 : vector<16x16xi1> to vector<16x16xi32>
    %390 = arith.sitofp %389 : vector<16x16xi32> to vector<16x16xf32>
    %391 = vector.extract_strided_slice %390 {offsets = [0, 0], sizes = [8, 16], strides = [1, 1]} : vector<16x16xf32> to vector<8x16xf32>
    %392 = vector.extract_strided_slice %390 {offsets = [8, 0], sizes = [8, 16], strides = [1, 1]} : vector<16x16xf32> to vector<8x16xf32>
    %393 = arith.addf %391, %392 : vector<8x16xf32>
    %394 = arith.addf %364, %393 : vector<8x16xf32>
    %c11_i32 = arith.constant 11 : i32
    %395 = arith.index_cast %c11_i32 : i32 to index
    %396 = memref.load %arg1[%395] : memref<16xi32, #tpu.memory_space<smem>>
    %397 = vector.broadcast %396 : i32 to vector<1x16xi32>
    %398 = arith.cmpi eq, %45, %397 : vector<1x16xi32>
    %399 = vector.broadcast %c11_i32 : i32 to vector<1x16xi32>
    %400 = arith.cmpi ne, %63, %399 : vector<1x16xi32>
    %401 = arith.andi %398, %400 : vector<1x16xi1>
    %402 = arith.index_cast %c11_i32 : i32 to index
    %c0_108 = arith.constant 0 : index
    %403 = vector.load %arg7[%402, %c0_108] : memref<16x16xf32, #tpu.memory_space<vmem>>, vector<1x16xf32>
    %cst_109 = arith.constant 5.000000e-02 : f32
    %404 = vector.broadcast %cst_109 : f32 to vector<1x16xf32>
    %405 = arith.addf %403, %404 : vector<1x16xf32>
    %cst_110 = arith.constant -1.000000e+09 : f32
    %406 = vector.broadcast %cst_110 : f32 to vector<1x16xf32>
    %407 = arith.select %401, %405, %406 : vector<1x16xi1>, vector<1x16xf32>
    %c0_111 = arith.constant 0 : index
    %c0_112 = arith.constant 0 : index
    %408 = vector.load %arg8[%c0_111, %c0_112] : memref<16x16xf32, #tpu.memory_space<vmem>>, vector<16x16xf32>
    %409 = vector.broadcast %407 : vector<1x16xf32> to vector<16x16xf32>
    %410 = arith.subf %409, %408 : vector<16x16xf32>
    %cst_113 = arith.constant 0.000000e+00 : f32
    %411 = vector.broadcast %cst_113 : f32 to vector<16x16xf32>
    %412 = arith.maximumf %410, %411 : vector<16x16xf32>
    %413 = vector.extract_strided_slice %412 {offsets = [0, 0], sizes = [8, 16], strides = [1, 1]} : vector<16x16xf32> to vector<8x16xf32>
    %414 = vector.extract_strided_slice %412 {offsets = [8, 0], sizes = [8, 16], strides = [1, 1]} : vector<16x16xf32> to vector<8x16xf32>
    %415 = arith.addf %413, %414 : vector<8x16xf32>
    %416 = arith.addf %386, %415 : vector<8x16xf32>
    %cst_114 = arith.constant 0.000000e+00 : f32
    %417 = vector.broadcast %cst_114 : f32 to vector<16x16xf32>
    %418 = arith.cmpf ogt, %412, %417 : vector<16x16xf32>
    %419 = arith.extui %418 : vector<16x16xi1> to vector<16x16xi32>
    %420 = arith.sitofp %419 : vector<16x16xi32> to vector<16x16xf32>
    %421 = vector.extract_strided_slice %420 {offsets = [0, 0], sizes = [8, 16], strides = [1, 1]} : vector<16x16xf32> to vector<8x16xf32>
    %422 = vector.extract_strided_slice %420 {offsets = [8, 0], sizes = [8, 16], strides = [1, 1]} : vector<16x16xf32> to vector<8x16xf32>
    %423 = arith.addf %421, %422 : vector<8x16xf32>
    %424 = arith.addf %394, %423 : vector<8x16xf32>
    %c12_i32 = arith.constant 12 : i32
    %425 = arith.index_cast %c12_i32 : i32 to index
    %426 = memref.load %arg1[%425] : memref<16xi32, #tpu.memory_space<smem>>
    %427 = vector.broadcast %426 : i32 to vector<1x16xi32>
    %428 = arith.cmpi eq, %45, %427 : vector<1x16xi32>
    %429 = vector.broadcast %c12_i32 : i32 to vector<1x16xi32>
    %430 = arith.cmpi ne, %63, %429 : vector<1x16xi32>
    %431 = arith.andi %428, %430 : vector<1x16xi1>
    %432 = arith.index_cast %c12_i32 : i32 to index
    %c0_115 = arith.constant 0 : index
    %433 = vector.load %arg7[%432, %c0_115] : memref<16x16xf32, #tpu.memory_space<vmem>>, vector<1x16xf32>
    %cst_116 = arith.constant 5.000000e-02 : f32
    %434 = vector.broadcast %cst_116 : f32 to vector<1x16xf32>
    %435 = arith.addf %433, %434 : vector<1x16xf32>
    %cst_117 = arith.constant -1.000000e+09 : f32
    %436 = vector.broadcast %cst_117 : f32 to vector<1x16xf32>
    %437 = arith.select %431, %435, %436 : vector<1x16xi1>, vector<1x16xf32>
    %c0_118 = arith.constant 0 : index
    %c0_119 = arith.constant 0 : index
    %438 = vector.load %arg8[%c0_118, %c0_119] : memref<16x16xf32, #tpu.memory_space<vmem>>, vector<16x16xf32>
    %439 = vector.broadcast %437 : vector<1x16xf32> to vector<16x16xf32>
    %440 = arith.subf %439, %438 : vector<16x16xf32>
    %cst_120 = arith.constant 0.000000e+00 : f32
    %441 = vector.broadcast %cst_120 : f32 to vector<16x16xf32>
    %442 = arith.maximumf %440, %441 : vector<16x16xf32>
    %443 = vector.extract_strided_slice %442 {offsets = [0, 0], sizes = [8, 16], strides = [1, 1]} : vector<16x16xf32> to vector<8x16xf32>
    %444 = vector.extract_strided_slice %442 {offsets = [8, 0], sizes = [8, 16], strides = [1, 1]} : vector<16x16xf32> to vector<8x16xf32>
    %445 = arith.addf %443, %444 : vector<8x16xf32>
    %446 = arith.addf %416, %445 : vector<8x16xf32>
    %cst_121 = arith.constant 0.000000e+00 : f32
    %447 = vector.broadcast %cst_121 : f32 to vector<16x16xf32>
    %448 = arith.cmpf ogt, %442, %447 : vector<16x16xf32>
    %449 = arith.extui %448 : vector<16x16xi1> to vector<16x16xi32>
    %450 = arith.sitofp %449 : vector<16x16xi32> to vector<16x16xf32>
    %451 = vector.extract_strided_slice %450 {offsets = [0, 0], sizes = [8, 16], strides = [1, 1]} : vector<16x16xf32> to vector<8x16xf32>
    %452 = vector.extract_strided_slice %450 {offsets = [8, 0], sizes = [8, 16], strides = [1, 1]} : vector<16x16xf32> to vector<8x16xf32>
    %453 = arith.addf %451, %452 : vector<8x16xf32>
    %454 = arith.addf %424, %453 : vector<8x16xf32>
    %c13_i32 = arith.constant 13 : i32
    %455 = arith.index_cast %c13_i32 : i32 to index
    %456 = memref.load %arg1[%455] : memref<16xi32, #tpu.memory_space<smem>>
    %457 = vector.broadcast %456 : i32 to vector<1x16xi32>
    %458 = arith.cmpi eq, %45, %457 : vector<1x16xi32>
    %459 = vector.broadcast %c13_i32 : i32 to vector<1x16xi32>
    %460 = arith.cmpi ne, %63, %459 : vector<1x16xi32>
    %461 = arith.andi %458, %460 : vector<1x16xi1>
    %462 = arith.index_cast %c13_i32 : i32 to index
    %c0_122 = arith.constant 0 : index
    %463 = vector.load %arg7[%462, %c0_122] : memref<16x16xf32, #tpu.memory_space<vmem>>, vector<1x16xf32>
    %cst_123 = arith.constant 5.000000e-02 : f32
    %464 = vector.broadcast %cst_123 : f32 to vector<1x16xf32>
    %465 = arith.addf %463, %464 : vector<1x16xf32>
    %cst_124 = arith.constant -1.000000e+09 : f32
    %466 = vector.broadcast %cst_124 : f32 to vector<1x16xf32>
    %467 = arith.select %461, %465, %466 : vector<1x16xi1>, vector<1x16xf32>
    %c0_125 = arith.constant 0 : index
    %c0_126 = arith.constant 0 : index
    %468 = vector.load %arg8[%c0_125, %c0_126] : memref<16x16xf32, #tpu.memory_space<vmem>>, vector<16x16xf32>
    %469 = vector.broadcast %467 : vector<1x16xf32> to vector<16x16xf32>
    %470 = arith.subf %469, %468 : vector<16x16xf32>
    %cst_127 = arith.constant 0.000000e+00 : f32
    %471 = vector.broadcast %cst_127 : f32 to vector<16x16xf32>
    %472 = arith.maximumf %470, %471 : vector<16x16xf32>
    %473 = vector.extract_strided_slice %472 {offsets = [0, 0], sizes = [8, 16], strides = [1, 1]} : vector<16x16xf32> to vector<8x16xf32>
    %474 = vector.extract_strided_slice %472 {offsets = [8, 0], sizes = [8, 16], strides = [1, 1]} : vector<16x16xf32> to vector<8x16xf32>
    %475 = arith.addf %473, %474 : vector<8x16xf32>
    %476 = arith.addf %446, %475 : vector<8x16xf32>
    %cst_128 = arith.constant 0.000000e+00 : f32
    %477 = vector.broadcast %cst_128 : f32 to vector<16x16xf32>
    %478 = arith.cmpf ogt, %472, %477 : vector<16x16xf32>
    %479 = arith.extui %478 : vector<16x16xi1> to vector<16x16xi32>
    %480 = arith.sitofp %479 : vector<16x16xi32> to vector<16x16xf32>
    %481 = vector.extract_strided_slice %480 {offsets = [0, 0], sizes = [8, 16], strides = [1, 1]} : vector<16x16xf32> to vector<8x16xf32>
    %482 = vector.extract_strided_slice %480 {offsets = [8, 0], sizes = [8, 16], strides = [1, 1]} : vector<16x16xf32> to vector<8x16xf32>
    %483 = arith.addf %481, %482 : vector<8x16xf32>
    %484 = arith.addf %454, %483 : vector<8x16xf32>
    %c14_i32 = arith.constant 14 : i32
    %485 = arith.index_cast %c14_i32 : i32 to index
    %486 = memref.load %arg1[%485] : memref<16xi32, #tpu.memory_space<smem>>
    %487 = vector.broadcast %486 : i32 to vector<1x16xi32>
    %488 = arith.cmpi eq, %45, %487 : vector<1x16xi32>
    %489 = vector.broadcast %c14_i32 : i32 to vector<1x16xi32>
    %490 = arith.cmpi ne, %63, %489 : vector<1x16xi32>
    %491 = arith.andi %488, %490 : vector<1x16xi1>
    %492 = arith.index_cast %c14_i32 : i32 to index
    %c0_129 = arith.constant 0 : index
    %493 = vector.load %arg7[%492, %c0_129] : memref<16x16xf32, #tpu.memory_space<vmem>>, vector<1x16xf32>
    %cst_130 = arith.constant 5.000000e-02 : f32
    %494 = vector.broadcast %cst_130 : f32 to vector<1x16xf32>
    %495 = arith.addf %493, %494 : vector<1x16xf32>
    %cst_131 = arith.constant -1.000000e+09 : f32
    %496 = vector.broadcast %cst_131 : f32 to vector<1x16xf32>
    %497 = arith.select %491, %495, %496 : vector<1x16xi1>, vector<1x16xf32>
    %c0_132 = arith.constant 0 : index
    %c0_133 = arith.constant 0 : index
    %498 = vector.load %arg8[%c0_132, %c0_133] : memref<16x16xf32, #tpu.memory_space<vmem>>, vector<16x16xf32>
    %499 = vector.broadcast %497 : vector<1x16xf32> to vector<16x16xf32>
    %500 = arith.subf %499, %498 : vector<16x16xf32>
    %cst_134 = arith.constant 0.000000e+00 : f32
    %501 = vector.broadcast %cst_134 : f32 to vector<16x16xf32>
    %502 = arith.maximumf %500, %501 : vector<16x16xf32>
    %503 = vector.extract_strided_slice %502 {offsets = [0, 0], sizes = [8, 16], strides = [1, 1]} : vector<16x16xf32> to vector<8x16xf32>
    %504 = vector.extract_strided_slice %502 {offsets = [8, 0], sizes = [8, 16], strides = [1, 1]} : vector<16x16xf32> to vector<8x16xf32>
    %505 = arith.addf %503, %504 : vector<8x16xf32>
    %506 = arith.addf %476, %505 : vector<8x16xf32>
    %cst_135 = arith.constant 0.000000e+00 : f32
    %507 = vector.broadcast %cst_135 : f32 to vector<16x16xf32>
    %508 = arith.cmpf ogt, %502, %507 : vector<16x16xf32>
    %509 = arith.extui %508 : vector<16x16xi1> to vector<16x16xi32>
    %510 = arith.sitofp %509 : vector<16x16xi32> to vector<16x16xf32>
    %511 = vector.extract_strided_slice %510 {offsets = [0, 0], sizes = [8, 16], strides = [1, 1]} : vector<16x16xf32> to vector<8x16xf32>
    %512 = vector.extract_strided_slice %510 {offsets = [8, 0], sizes = [8, 16], strides = [1, 1]} : vector<16x16xf32> to vector<8x16xf32>
    %513 = arith.addf %511, %512 : vector<8x16xf32>
    %514 = arith.addf %484, %513 : vector<8x16xf32>
    %c15_i32 = arith.constant 15 : i32
    %515 = arith.index_cast %c15_i32 : i32 to index
    %516 = memref.load %arg1[%515] : memref<16xi32, #tpu.memory_space<smem>>
    %517 = vector.broadcast %516 : i32 to vector<1x16xi32>
    %518 = arith.cmpi eq, %45, %517 : vector<1x16xi32>
    %519 = vector.broadcast %c15_i32 : i32 to vector<1x16xi32>
    %520 = arith.cmpi ne, %63, %519 : vector<1x16xi32>
    %521 = arith.andi %518, %520 : vector<1x16xi1>
    %522 = arith.index_cast %c15_i32 : i32 to index
    %c0_136 = arith.constant 0 : index
    %523 = vector.load %arg7[%522, %c0_136] : memref<16x16xf32, #tpu.memory_space<vmem>>, vector<1x16xf32>
    %cst_137 = arith.constant 5.000000e-02 : f32
    %524 = vector.broadcast %cst_137 : f32 to vector<1x16xf32>
    %525 = arith.addf %523, %524 : vector<1x16xf32>
    %cst_138 = arith.constant -1.000000e+09 : f32
    %526 = vector.broadcast %cst_138 : f32 to vector<1x16xf32>
    %527 = arith.select %521, %525, %526 : vector<1x16xi1>, vector<1x16xf32>
    %c0_139 = arith.constant 0 : index
    %c0_140 = arith.constant 0 : index
    %528 = vector.load %arg8[%c0_139, %c0_140] : memref<16x16xf32, #tpu.memory_space<vmem>>, vector<16x16xf32>
    %529 = vector.broadcast %527 : vector<1x16xf32> to vector<16x16xf32>
    %530 = arith.subf %529, %528 : vector<16x16xf32>
    %cst_141 = arith.constant 0.000000e+00 : f32
    %531 = vector.broadcast %cst_141 : f32 to vector<16x16xf32>
    %532 = arith.maximumf %530, %531 : vector<16x16xf32>
    %533 = vector.extract_strided_slice %532 {offsets = [0, 0], sizes = [8, 16], strides = [1, 1]} : vector<16x16xf32> to vector<8x16xf32>
    %534 = vector.extract_strided_slice %532 {offsets = [8, 0], sizes = [8, 16], strides = [1, 1]} : vector<16x16xf32> to vector<8x16xf32>
    %535 = arith.addf %533, %534 : vector<8x16xf32>
    %536 = arith.addf %506, %535 : vector<8x16xf32>
    %cst_142 = arith.constant 0.000000e+00 : f32
    %537 = vector.broadcast %cst_142 : f32 to vector<16x16xf32>
    %538 = arith.cmpf ogt, %532, %537 : vector<16x16xf32>
    %539 = arith.extui %538 : vector<16x16xi1> to vector<16x16xi32>
    %540 = arith.sitofp %539 : vector<16x16xi32> to vector<16x16xf32>
    %541 = vector.extract_strided_slice %540 {offsets = [0, 0], sizes = [8, 16], strides = [1, 1]} : vector<16x16xf32> to vector<8x16xf32>
    %542 = vector.extract_strided_slice %540 {offsets = [8, 0], sizes = [8, 16], strides = [1, 1]} : vector<16x16xf32> to vector<8x16xf32>
    %543 = arith.addf %541, %542 : vector<8x16xf32>
    %544 = arith.addf %514, %543 : vector<8x16xf32>
    %c16_i32_143 = arith.constant 16 : i32
    %c0_144 = arith.constant 0 : index
    %c0_145 = arith.constant 0 : index
    %545 = vector.load %arg10[%c0_144, %c0_145] : memref<8x16xf32, #tpu.memory_space<vmem>>, vector<8x16xf32>
    %546 = arith.addf %545, %536 : vector<8x16xf32>
    %c0_146 = arith.constant 0 : index
    %c0_147 = arith.constant 0 : index
    %547 = vector.load %arg10[%c0_146, %c0_147] : memref<8x16xf32, #tpu.memory_space<vmem>>, vector<8x16xf32>
    tpu.vector_store %arg10[%c0_146, %c0_147], %546 {strides = array<i32>} : memref<8x16xf32, #tpu.memory_space<vmem>>, vector<8x16xf32>,
    %c0_148 = arith.constant 0 : index
    %c0_149 = arith.constant 0 : index
    %548 = vector.load %arg11[%c0_148, %c0_149] : memref<8x16xf32, #tpu.memory_space<vmem>>, vector<8x16xf32>
    %549 = arith.addf %548, %544 : vector<8x16xf32>
    %c0_150 = arith.constant 0 : index
    %c0_151 = arith.constant 0 : index
    %550 = vector.load %arg11[%c0_150, %c0_151] : memref<8x16xf32, #tpu.memory_space<vmem>>, vector<8x16xf32>
    tpu.vector_store %arg11[%c0_150, %c0_151], %549 {strides = array<i32>} : memref<8x16xf32, #tpu.memory_space<vmem>>, vector<8x16xf32>,
    %c0_i32_152 = arith.constant 0 : i32
    %551 = arith.cmpi eq, %arg0, %c0_i32_152 : i32
    %552 = arith.extui %551 : i1 to i32
    %c0_i32_153 = arith.constant 0 : i32
    %553 = arith.cmpi ne, %552, %c0_i32_153 : i32
    scf.if %553 {
      %c0_154 = arith.constant 0 : index
      %c0_155 = arith.constant 0 : index
      %554 = vector.load %arg9[%c0_154, %c0_155] : memref<16x1xf32, #tpu.memory_space<vmem>>, vector<16x1xf32>
      %cst_156 = arith.constant dense<0.000000e+00> : vector<16xf32>
      %555 = vector.multi_reduction <add>, %554, %cst_156 [1] : vector<16x1xf32> to vector<16xf32>
      %556 = vector.shape_cast %555 : vector<16xf32> to vector<16x1xf32>
      %cst_157 = arith.constant dense<0.000000e+00> : vector<1xf32>
      %557 = vector.multi_reduction <add>, %556, %cst_157 [0] : vector<16x1xf32> to vector<1xf32>
      %558 = vector.shape_cast %557 : vector<1xf32> to vector<1x1xf32>
      %c0_158 = arith.constant 0 : index
      %c0_159 = arith.constant 0 : index
      %559 = vector.load %arg10[%c0_158, %c0_159] : memref<8x16xf32, #tpu.memory_space<vmem>>, vector<8x16xf32>
      %cst_160 = arith.constant dense<0.000000e+00> : vector<8xf32>
      %560 = vector.multi_reduction <add>, %559, %cst_160 [1] : vector<8x16xf32> to vector<8xf32>
      %561 = vector.shape_cast %560 : vector<8xf32> to vector<8x1xf32>
      %cst_161 = arith.constant dense<0.000000e+00> : vector<1xf32>
      %562 = vector.multi_reduction <add>, %561, %cst_161 [0] : vector<8x1xf32> to vector<1xf32>
      %563 = vector.shape_cast %562 : vector<1xf32> to vector<1x1xf32>
      %c0_162 = arith.constant 0 : index
      %c0_163 = arith.constant 0 : index
      %564 = vector.load %arg11[%c0_162, %c0_163] : memref<8x16xf32, #tpu.memory_space<vmem>>, vector<8x16xf32>
      %cst_164 = arith.constant dense<0.000000e+00> : vector<8xf32>
      %565 = vector.multi_reduction <add>, %564, %cst_164 [1] : vector<8x16xf32> to vector<8xf32>
      %566 = vector.shape_cast %565 : vector<8xf32> to vector<8x1xf32>
      %cst_165 = arith.constant dense<0.000000e+00> : vector<1xf32>
      %567 = vector.multi_reduction <add>, %566, %cst_165 [0] : vector<8x1xf32> to vector<1xf32>
      %568 = vector.shape_cast %567 : vector<1xf32> to vector<1x1xf32>
      %cst_166 = arith.constant 0.000000e+00 : f32
      %569 = vector.broadcast %cst_166 : f32 to vector<1x1xf32>
      %570 = arith.cmpf ogt, %568, %569 : vector<1x1xf32>
      %cst_167 = arith.constant 1.000000e+00 : f32
      %571 = vector.broadcast %cst_167 : f32 to vector<1x1xf32>
      %572 = arith.maximumf %568, %571 : vector<1x1xf32>
      %573 = arith.divf %563, %572 : vector<1x1xf32>
      %cst_168 = arith.constant 0.000000e+00 : f32
      %574 = vector.broadcast %cst_168 : f32 to vector<1x1xf32>
      %575 = arith.select %570, %573, %574 : vector<1x1xi1>, vector<1x1xf32>
      %cst_169 = arith.constant 1.000000e+00 : f32
      %576 = vector.broadcast %cst_169 : f32 to vector<1x1xf32>
      %577 = arith.mulf %576, %575 : vector<1x1xf32>
      %cst_170 = arith.constant 5.000000e-01 : f32
      %578 = vector.broadcast %cst_170 : f32 to vector<1x1xf32>
      %579 = arith.mulf %578, %558 : vector<1x1xf32>
      %cst_171 = arith.constant 6.250000e-02 : f32
      %580 = vector.broadcast %cst_171 : f32 to vector<1x1xf32>
      %581 = arith.mulf %579, %580 : vector<1x1xf32>
      %582 = arith.addf %577, %581 : vector<1x1xf32>
      %c0_172 = arith.constant 0 : index
      %c0_173 = arith.constant 0 : index
      %583 = vector.load %arg6[%c0_172, %c0_173] : memref<1x1xf32, #tpu.memory_space<vmem>>, vector<1x1xf32>
      tpu.vector_store %arg6[%c0_172, %c0_173], %582 {strides = array<i32>} : memref<1x1xf32, #tpu.memory_space<vmem>>, vector<1x1xf32>,
    } else {
    }
    return
  }
  func.func @transform_0(%arg0: i32, %arg1: memref<16xi32, #tpu.memory_space<smem>>) -> (i32, i32) {
    %c0_i32 = arith.constant 0 : i32
    %c0_i32_0 = arith.constant 0 : i32
    return %c0_i32, %arg0 : i32, i32
  }
  func.func @transform_1(%arg0: i32, %arg1: memref<16xi32, #tpu.memory_space<smem>>) -> (i32, i32) {
    %c0_i32 = arith.constant 0 : i32
    %c0_i32_0 = arith.constant 0 : i32
    %c0_i32_1 = arith.constant 0 : i32
    return %c0_i32, %c0_i32_0 : i32, i32
  }
  func.func @transform_2(%arg0: i32, %arg1: memref<16xi32, #tpu.memory_space<smem>>) -> (i32, i32) {
    %c0_i32 = arith.constant 0 : i32
    %c0_i32_0 = arith.constant 0 : i32
    %c0_i32_1 = arith.constant 0 : i32
    return %c0_i32, %c0_i32_0 : i32, i32
  }
  func.func @transform_3(%arg0: i32, %arg1: memref<16xi32, #tpu.memory_space<smem>>) -> (i32, i32) {
    %c0_i32 = arith.constant 0 : i32
    %c0_i32_0 = arith.constant 0 : i32
    return %arg0, %c0_i32 : i32, i32
  }
  func.func @transform_4(%arg0: i32, %arg1: memref<16xi32, #tpu.memory_space<smem>>) -> (i32, i32) {
    %c0_i32 = arith.constant 0 : i32
    %c0_i32_0 = arith.constant 0 : i32
    %c0_i32_1 = arith.constant 0 : i32
    return %c0_i32, %c0_i32_0 : i32, i32
  }
}

</mosaic_0001>

<bundles_post_ra>
// kernel: tpu_custom_call.1
= control target key start
LH: loop header
LB: loop body
LE: loop exit
PB: predicated region body
PF: predicated region fallthrough
CT: control target
= control target key end

     0   :  { %s978_s21 = smov [#allocation8]   ;;  %s1668_s0 = inlined_call_operand.vmem [shape: s32[16], index: 0, kind: input, shape index: {}]   ;;  %s1669_s1 = inlined_call_operand.vmem [shape: s32[1,16], index: 1, kind: input, shape index: {}]   ;;  %s1670_s2 = inlined_call_operand.vmem [shape: s32[16,1], index: 2, kind: input, shape index: {}]   ;;  %s1671_s3 = inlined_call_operand.vmem [shape: f32[16,8], index: 3, kind: input, shape index: {}]   ;;  %s1672_s4 = inlined_call_operand.vmem [shape: f32[16,8], index: 4, kind: input, shape index: {}]   ;;  %s1673_s5 = inlined_call_operand.hbm [shape: f32[1,1], index: 5, kind: output, shape index: {}]  }
   0x1   :  { %s11_s20 = sshll.u32 %s1668_s0, 4  ;;  %s12_s20 = int_to_ptr.vmem [resolvable:$true] %s11_s20 }
   0x2   :  { %14 = dma.vmem_to_smem %s12_s20, 16, %s978_s21, [#allocation7] }
   0x3   :  { %974 = dma.done.wait [#allocation7], 16 }
   0x4   :  { %975 = vsyncadd [#allocation7], 4294967280 }
   0x5   :  { %17 = sfence }
   0x6   :  { %v1018_v0 = vld [vmem:[%s1672_s4] sm:$0xff]  ;;  %vm43_vm0 = vcmask 64512   ;;  %v105_v1 = vld [vmem:[%s1671_s3 + $0x8] sm:$0xff]  ;;  %v979_v5 = vmov 0  }
   0x7   :  { %v1026_v2 = vld [vmem:[%s1670_s2] sm:$0xff]  ;;  %v44_v3 = vsel %vm43_vm0, %v1018_v0, -inf  ;;  %v118_v4 = vsel %vm43_vm0, %v105_v1, 0  ;;  %921 = vset.pattern.permute.xlu0 %v979_v5  ;;  %922 = vset.pattern.permute.xlu1 %v979_v5 }
   0x8   :  { %v104_v6 = vld [vmem:[%s1671_s3] sm:$0xff]  ;;  %vm355_vm1 = vcmp.lt.s32.totalorder %v1026_v2, 0  ;;  %45 = vmax.xlane.f32.xlu2 %v44_v3  ;;  %v134_v7 = vand.u32 4294901760, %v118_v4  ;;  %347 = vperm.xlu0 %921, %v1026_v2  }
   0x9   :  { %v115_v8 = vsel %vm43_vm0, %v104_v6, 0  ;;  %v357_v9 = vsel %vm355_vm1, 1, %v979_v5 }
   0xa   :  { %18 = vsyncpa [#allocation10], 0  ;;  %v136_v10 = vand.u32 4294901760, %v115_v8  ;;  %360 = vperm.xlu1 %922, %v357_v9   ;;  %913 = vmatpush.xpose.msra.mxu2 %v134_v7  ;;  %v1043_v11 = vld [vmem:[%s1672_s4 + $0x8] sm:$0xff]  ;;  %v147_v12 = vsub.f32 %v118_v4, %v134_v7  ;;  %v68_v31 = vlaneseq  ;;  %vm35_vm6 = vcmask 130048   ;;  %s1100_s9 = sld [smem:[#allocation8]] }
   0xb   :  { %v1048_v13 = vld [vmem:[%s1670_s2 + $0x8] sm:$0xff]  ;;  %135 = vmatpush.xpose.msra.mxu0 %v134_v7  ;;  %v47_v16 = vsel %vm43_vm0, %v1043_v11, -inf  ;;  %s1106_s10 = sld [smem:[#allocation8 + $0x2]]  ;;  %s981_s24 = smov [#allocation9]  }
   0xc   :  { %v176_v14 = vsub.f32 %v115_v8, %v136_v10  ;;  %vm356_vm2 = vcmp.lt.s32.totalorder %v1048_v13, 0  ;;  %v148_v15 = vand.u32 4294901760, %v147_v12  ;;  %v1074_v36 = vand.u32 127, %v68_v31  ;;  %v1086_v8 = vld [vmem:[%s1669_s1] sm:$0x1]  ;;  %s1108_s11 = sld [smem:[#allocation8 + $0x3]] }
   0xd   :  { %v358_v19 = vsel %vm356_vm2, 1, %v979_v5  ;;  %vm369_vm5 = vcmp.lt.s32.totalorder %v1086_v8, 0  ;;  %s1119_s12 = sld [smem:[#allocation8 + $0x4]]  ;;  %s853_s25 = sshll.u32 %s981_s24, 4  ;;  %s854_s25 = int_to_ptr.vmem [resolvable:$true] %s853_s25 }
   0xe   :  { %v177_v17 = vand.u32 4294901760, %v176_v14  ;;  %914 = vmatpush.xpose.msra.mxu2 %v136_v10  ;;  %v149_v18 = vsub.f32 %v147_v12, %v148_v15  ;;  %s1121_s13 = sld [smem:[#allocation8 + $0x5]]  ;;  %vm384_vm2 = vcmp.ne.s32.totalorder %v1074_v36, 0  ;;  %s855_s0 = sshll.u32 %s1673_s5, 4  ;;  %s856_s0 = int_to_ptr.hbm [resolvable:$true] %s855_s0 }
   0xf   :  { %137 = vmatpush.xpose.msra.mxu0 %v136_v10  ;;  %s1127_s14 = sld [smem:[#allocation8 + $0x6]] }
  0x10   :  { %v178_v20 = vsub.f32 %v176_v14, %v177_v17  ;;  %48 = vmax.xlane.f32.xlu2 %v47_v16  ;;  %v150_v21 = vand.u32 4294901760, %v149_v18  ;;  %350 = vperm.xlu0 %921, %v1048_v13   ;;  %v370_v16 = vsel %vm369_vm5, 1, %v979_v5  ;;  %v980_v18 = vmov 0.0   ;;  %s1131_s15 = sld [smem:[#allocation8 + $0x7]] }
  0x11   :  { %36 = vst.msk [vmem:[#allocation5] sm:$0xff] %vm35_vm6, %v980_v18  ;;  %s1135_s16 = sld [smem:[#allocation8 + $0x8]] }
  0x12   :  { %206 = vmatpush.xpose.msrb.mxu2 %v147_v12  ;;  %363 = vperm.xlu1 %922, %v358_v19   ;;  %v179_v22 = vand.u32 4294901760, %v178_v20  ;;  %37 = vst.msk [vmem:[#allocation6] sm:$0xff] %vm35_vm6, %v980_v18  ;;  %v371_v19 = vperm.slane %v370_v16, 0  ;;  %s1139_s17 = sld [smem:[#allocation8 + $0x9]] }
  0x13   :  { %269 = vmatpush.xpose.msrb.mxu0 %v148_v15  ;;  %151 = vmatmul.f32.vlgmr.msra.gmra.mxu2 %v150_v21  ;;  %s1147_s18 = sld [smem:[#allocation8 + $0xa]] }
  0x14   :  { %915 = vmatpush.xpose.msra.mxu3 %v150_v21  ;;  %174 = vmatpush.xpose.msra.mxu1 %v150_v21  ;;  %vm1110_vm9 = vcmp.eq.s32.totalorder %v371_v19, 1  ;;  %s1160_s19 = sld [smem:[#allocation8 + $0xb]] }
  0x15   :  { %143 = vmatmul.f32.vlgmr.msra.gmra.mxu0 %v179_v22  ;;  %s1169_s20 = sld [smem:[#allocation8 + $0xc]] }
  0x16   :  { %209 = vmatpush.xpose.msrb.mxu2 %v176_v14  ;;  %s1183_s21 = sld [smem:[#allocation8 + $0xd]] }
  0x17   :  { %273 = vmatpush.xpose.msrb.mxu0 %v177_v17  ;;  %s1197_s22 = sld [smem:[#allocation8 + $0xe]] }
  0x18   :  { %916 = vmatpush.xpose.msra.mxu3 %v179_v22  ;;  %180 = vmatpush.xpose.msra.mxu1 %v179_v22  ;;  %s1211_s23 = sld [smem:[#allocation8 + $0xf]] }
  0x19   :  { %71 = vperm.xlu0 %921, %v1026_v2  }
  0x1a   :  { %74 = vperm.xlu1 %922, %v1048_v13  }
  0x1b   :  { %186 = vmatmul.f32.vlgmr.msra.gmra.mxu3 %v134_v7  ;;  %212 = vmatmul.f32.vlgmr.msrb.gmra.mxu2 %v176_v14 }
  0x1c   :  { %236 = vmatpush.xpose.msrb.mxu3 %v134_v7  ;;  %298 = vmatpush.xpose.msrb.mxu1 %v134_v7 }
  0x1d   :  { %182 = vmatmul.f32.vlgmr.msra.gmra.mxu1 %v136_v10  ;;  %275 = vmatmul.f32.vlgmr.msrb.gmra.mxu0 %v136_v10 }
  0x20   :  { %238 = vmatpush.xpose.msrb.mxu3 %v136_v10  ;;  %300 = vmatpush.xpose.msrb.mxu1 %v136_v10 }
  0x23   :  { %242 = vmatmul.f32.vlgmr.msrb.gmra.mxu3 %v177_v17  ;;  %217 = vmatmul.f32.gmra.mxu2 %v147_v12 }
  0x25   :  { %302 = vmatmul.f32.vlgmr.msrb.gmra.mxu1 %v136_v10  ;;  %279 = vmatmul.f32.gmra.mxu0 %v134_v7 }
  0x2b   :  { %248 = vmatmul.f32.gmra.mxu3 %v148_v15  ;;  %v923_v15 = vld [vmem:[%s1669_s1] ss:$0 sm:$0xff]  ;;  %s1104_s1 = sld [smem:[#allocation8 + $0x1]] }
  0x2d   :  { %306 = vmatmul.f32.gmra.mxu1 %v134_v7 }
  0x7a   :  { %v1057_v23 = vpop.permute.xlu0 %347 }
  0x7b   :  { %v1059_v24 = vpop.xlane.xlu2 %45  ;;  %vm353_vm7 = vcmp.eq.s32.totalorder %v1057_v23, %v923_v15 }
  0x7c   :  { %v1061_v25 = vpop.permute.xlu1 %360  ;;  %v50_v26 = vsub.f32 %v1018_v0, %v1059_v24 }
  0x7d   :  { %vm365_vm8 = vcmp.eq.s32.totalorder %v1061_v25, 1 }
  0x7e   :  { %v52_v27 = vmul.f32 1.442695, %v50_v26  ;;  %vm1114_vm10 = vmor %vm353_vm7, %vm365_vm8  ;;  %vm436_vm7 = vcmp.ne.s32.totalorder %v1074_v36, 2 }
  0x7f   :  { %vm373_vm11 = vmor %vm1114_vm10, %vm1110_vm9 }
  0x80   :  { %924 = vpow2.f32 %v52_v27 }
  0x82   :  { %v1065_v28 = vpop.permute.xlu0 %350 }
  0x83   :  { %v1067_v29 = vpop.xlane.xlu2 %48  ;;  %vm354_vm13 = vcmp.eq.s32.totalorder %v1065_v28, %v923_v15  ;;  %v734_v28 = vstv %s1197_s22 }
  0x84   :  { %v1069_v30 = vpop.permute.xlu1 %363  ;;  %v51_v32 = vsub.f32 %v1043_v11, %v1067_v29 }
  0x85   :  { %vm366_vm14 = vcmp.eq.s32.totalorder %v1069_v30, 1 }
  0x86   :  { %v925_v33 = vpop.eup %924  ;;  %v54_v34 = vmul.f32 1.442695, %v51_v32 }
  0x87   :  { %v56_v35 = vsel %vm43_vm0, %v925_v33, 0.0 }
  0x88   :  { %926 = vpow2.f32 %v54_v34  ;;  %57 = vadd.xlane.f32.xlu2 %v56_v35 }
  0x8b   :  { %v72_v37 = vpop.permute.xlu0 %71 }
  0x8c   :  { %vm76_vm3 = vcmp.eq.s32.totalorder %v1074_v36, %v72_v37  ;;  %v75_v39 = vpop.permute.xlu1 %74  ;;  %v382_v37 = vstv %s1100_s9 }
  0x8d   :  { %v78_v38 = vsel %vm76_vm3, %v1018_v0, 0.0  ;;  %vm77_vm4 = vcmp.eq.s32.totalorder %v1074_v36, %v75_v39  ;;  %vm1150_vm1 = vcmp.eq.s32.totalorder %v1086_v8, %v382_v37 }
  0x8e   :  { %v80_v40 = vsel %vm43_vm0, %v78_v38, 0.0  ;;  %v927_v41 = vpop.eup %926  ;;  %v79_v43 = vsel %vm77_vm4, %v1043_v11, 0.0  ;;  %v409_v38 = vstv %s1104_s1  ;;  %vm411_vm4 = vcmp.ne.s32.totalorder %v1074_v36, 1 }
  0x8f   :  { %v59_v42 = vsel %vm43_vm0, %v927_v41, 0.0  ;;  %v83_v45 = vsel %vm43_vm0, %v79_v43, 0.0  ;;  %vm1141_vm0 = vmor %vm354_vm13, %vm366_vm14  ;;  %v459_v41 = vstv %s1108_s11  ;;  %vm1156_vm3 = vcmp.eq.s32.totalorder %v1086_v8, %v409_v38 }
  0x90   :  { %60 = vadd.xlane.f32.xlu0 %v59_v42  ;;  %81 = vadd.xlane.f32.xlu2 %v80_v40  ;;  %v434_v40 = vstv %s1106_s10  ;;  %vm374_vm8 = vmor %vm1141_vm0, %vm1110_vm9  ;;  %vm1176_vm10 = vcmp.eq.s32.totalorder %v1086_v8, %v459_v41  ;;  %vm486_vm13 = vcmp.ne.s32.totalorder %v1074_v36, 4  ;;  %vm1700_vm9 = vcmp.ne.s32.totalorder %v1074_v36, 3 }
  0x91   :  { %vm1164_vm5 = vcmp.eq.s32.totalorder %v1086_v8, %v434_v40  ;;  %vm1255_vm0 = vmand %vm1176_vm10, %vm1700_vm9  ;;  %vm636_vm9 = vcmp.ne.s32.totalorder %v1074_v36, 10 }
  0x92   :  { %v144_v46 = vpop.f32.mrf.mxu0 }
  0x96   :  { %v152_v44 = vpop.f32.mrf.mxu2 }
  0x98   :  { %84 = vadd.xlane.f32.xlu2 %v83_v45 }
  0x9a   :  { %v183_v48 = vpop.f32.mrf.mxu1  ;;  %v276_v51 = vpop.f32.mrf.mxu0 }
  0x9b   :  { %v184_v50 = vadd.f32 %v183_v48, %v144_v46  ;;  %v509_v48 = vstv %s1121_s13 }
  0x9e   :  { %v187_v47 = vpop.f32.mrf.mxu3  ;;  %v213_v49 = vpop.f32.mrf.mxu2 }
  0x9f   :  { %v214_v52 = vadd.f32 %v213_v49, %v184_v50  ;;  %v188_v58 = vadd.f32 %v187_v47, %v152_v44  ;;  %v484_v47 = vstv %s1119_s12 }
  0xa0   :  { %vm1215_vm14 = vcmp.eq.s32.totalorder %v1086_v8, %v484_v47 }
  0xa2   :  { %v303_v55 = vpop.f32.mrf.mxu1  ;;  %v280_v63 = vpop.f32.mrf.mxu0 }
  0xa6   :  { %v243_v53 = vpop.f32.mrf.mxu3  ;;  %v218_v57 = vpop.f32.mrf.mxu2 }
  0xa7   :  { %v244_v54 = vadd.f32 %v243_v53, %v214_v52  ;;  %v219_v60 = vadd.f32 %v218_v57, %v188_v58 }
  0xa9   :  { %v277_v56 = vadd.f32 %v276_v51, %v244_v54  ;;  %v534_v51 = vstv %s1127_s14 }
  0xaa   :  { %v307_v6 = vpop.f32.mrf.mxu1 }
  0xab   :  { %v304_v59 = vadd.f32 %v303_v55, %v277_v56 }
  0xad   :  { %v310_v61 = vmul.f32 2.0, %v304_v59 }
  0xae   :  { %v249_v62 = vpop.f32.mrf.mxu3 }
  0xaf   :  { %v312_v0 = vsub.f32 2.0, %v310_v61  ;;  %v250_v1 = vadd.f32 %v249_v62, %v219_v60  ;;  %v559_v60 = vstv %s1131_s15 }
  0xb1   :  { %v314_v3 = vmax.f32 %v312_v0, 0.0  ;;  %v281_v4 = vadd.f32 %v280_v63, %v250_v1  ;;  %v584_v1 = vstv %s1135_s16 }
  0xb2   :  { %vm1277_vm10 = vcmp.eq.s32.totalorder %v1086_v8, %v584_v1 }
  0xb3   :  { %928 = vrsqrt.f32 %v314_v3  ;;  %v308_v7 = vadd.f32 %v307_v6, %v281_v4  ;;  %vm323_vm12 = vcmp.eq.f32.partialorder %v314_v3, inf  ;;  %v326_v31 = vand.u32 2147483648, %v314_v3 }
  0xb4   :  { %vm325_vm15 = vcmp.eq.f32.partialorder %v314_v3, 0.0 }
  0xb5   :  { %v311_v9 = vmul.f32 2.0, %v308_v7  ;;  %v609_v7 = vstv %s1139_s17 }
  0xb7   :  { %v313_v10 = vsub.f32 2.0, %v311_v9 }
  0xb9   :  { %v929_v11 = vpop.eup %928  ;;  %v1089_v14 = vmax.f32 %v313_v10, 0.0 }
  0xba   :  { %v317_v12 = vmul.f32 %v929_v11, %v314_v3 }
  0xbb   :  { %930 = vrsqrt.f32 %v1089_v14  ;;  %v338_v52 = vand.u32 2147483648, %v1089_v14 }
  0xbc   :  { %v318_v17 = vmul.f32 %v929_v11, %v317_v12 }
  0xbe   :  { %v319_v20 = vmul.f32 0.5, %v318_v17 }
  0xc0   :  { %v320_v5 = vsub.f32 1.5, %v319_v20 }
  0xc1   :  { %v931_v21 = vpop.eup %930 }
  0xc2   :  { %v321_v27 = vmul.f32 %v929_v11, %v320_v5  ;;  %v329_v23 = vmul.f32 %v931_v21, %v1089_v14 }
  0xc4   :  { %v322_v25 = vmul.f32 %v321_v27, %v314_v3  ;;  %v330_v32 = vmul.f32 %v931_v21, %v329_v23 }
  0xc6   :  { %v324_v33 = vsel %vm323_vm12, %v314_v3, %v322_v25  ;;  %v331_v35 = vmul.f32 0.5, %v330_v32  ;;  %vm1190_vm12 = vmand %vm1150_vm1, %vm384_vm2  ;;  %vm536_vm2 = vcmp.ne.s32.totalorder %v1074_v36, 6  ;;  %v684_v32 = vstv %s1169_s20 }
  0xc7   :  { %v327_v34 = vsel %vm325_vm15, %v326_v31, %v324_v33  ;;  %vm335_vm15 = vcmp.eq.f32.partialorder %v1089_v14, inf  ;;  %vm1206_vm1 = vmand %vm1156_vm3, %vm411_vm4  ;;  %vm1220_vm3 = vcmp.eq.s32.totalorder %v1086_v8, %v509_v48  ;;  %v709_v33 = vstv %s1183_s21 }
  0xc8   :  { %v375_v39 = vsel %vm373_vm11, 1e+09, %v327_v34  ;;  %341 = vst.msk [vmem:[#allocation2] sm:$0xff] %vm35_vm6, %v327_v34  ;;  %v332_v30 = vsub.f32 1.5, %v331_v35  ;;  %vm337_vm11 = vcmp.eq.f32.partialorder %v1089_v14, 0.0  ;;  %vm1229_vm4 = vmand %vm1164_vm5, %vm436_vm7  ;;  %vm1260_vm5 = vcmp.eq.s32.totalorder %v1086_v8, %v559_v60 }
  0xc9   :  { %377 = vst.msk [vmem:[#allocation3] sm:$0xff] %vm35_vm6, %v375_v39  ;;  %vm561_vm7 = vcmp.ne.s32.totalorder %v1074_v36, 7  ;;  %v759_v48 = vstv %s1211_s23 }
  0xca   :  { %v333_v44 = vmul.f32 %v931_v21, %v332_v30  ;;  %v659_v21 = vstv %s1160_s19 }
  0xcc   :  { %v334_v49 = vmul.f32 %v333_v44, %v1089_v14 }
  0xce   :  { %v336_v54 = vsel %vm335_vm15, %v1089_v14, %v334_v49  ;;  %v634_v14 = vstv %s1147_s18  ;;  %vm1709_vm15 = vcmp.ne.s32.totalorder %v1074_v36, 5 }
  0xcf   :  { %v386_v55 = vld [vmem:[#allocation2] sm:$0x1]  ;;  %v413_v56 = vld [vmem:[#allocation2 + $0x1] sm:$0x1]  ;;  %v438_v57 = vld [vmem:[#allocation2 + $0x2] sm:$0x1]  ;;  %v339_v61 = vsel %vm337_vm11, %v338_v52, %v336_v54  ;;  %vm1241_vm11 = vcmp.eq.s32.totalorder %v1086_v8, %v534_v51 }
  0xd0   :  { %v387_v62 = vadd.f32 0.05, %v386_v55  ;;  %v414_v63 = vadd.f32 0.05, %v413_v56  ;;  %v376_v3 = vsel %vm374_vm8, 1e+09, %v339_v61  ;;  %vm1272_vm8 = vmand %vm1215_vm14, %vm486_vm13  ;;  %vm1294_vm14 = vcmp.eq.s32.totalorder %v1086_v8, %v609_v7 }
  0xd1   :  { %342 = vst.msk [vmem:[#allocation2 + $0x8] sm:$0xff] %vm35_vm6, %v339_v61  ;;  %v439_v4 = vadd.f32 0.05, %v438_v57  ;;  %v463_v19 = vld [vmem:[#allocation2 + $0x3] sm:$0x1]  ;;  %v1283_v22 = vld [vmem:[#allocation3] sm:$0xff]  ;;  %vm1289_vm13 = vmand %vm1220_vm3, %vm1709_vm15 }
  0xd2   :  { %378 = vst.msk [vmem:[#allocation3 + $0x8] sm:$0xff] %vm35_vm6, %v376_v3  ;;  %v388_v9 = vsel %vm1190_vm12, %v387_v62, -1e+09  ;;  %v415_v10 = vsel %vm1206_vm1, %v414_v63, -1e+09  ;;  %vm586_vm12 = vcmp.ne.s32.totalorder %v1074_v36, 8  ;;  %vm1307_vm3 = vmand %vm1241_vm11, %vm536_vm2  ;;  %vm1342_vm2 = vcmp.eq.s32.totalorder %v1086_v8, %v659_v21 }
  0xd3   :  { %v392_v15 = vperm.slane %v388_v9, 0  ;;  %v417_v16 = vperm.slane %v415_v10, 0  ;;  %v440_v17 = vsel %vm1229_vm4, %v439_v4, -1e+09  ;;  %v464_v27 = vadd.f32 0.05, %v463_v19  ;;  %vm1377_vm15 = vmand %vm1260_vm5, %vm561_vm7 }
  0xd4   :  { %v442_v26 = vperm.slane %v440_v17, 0  ;;  %v488_v23 = vld [vmem:[#allocation2 + $0x4] sm:$0x1]  ;;  %vm611_vm1 = vcmp.ne.s32.totalorder %v1074_v36, 9  ;;  %v513_v38 = vld [vmem:[#allocation2 + $0x5] sm:$0x1]  ;;  %vm1316_vm4 = vcmp.eq.s32.totalorder %v1086_v8, %v634_v14  ;;  %vm1393_vm5 = vmand %vm1277_vm10, %vm586_vm12  ;;  %vm1414_vm10 = vcmp.eq.s32.totalorder %v1086_v8, %v709_v33 }
  0xd5   :  { %v394_v34 = vsub.f32 %v392_v15, %v1283_v22  ;;  %v419_v35 = vsub.f32 %v417_v16, %v1283_v22  ;;  %v489_v37 = vadd.f32 0.05, %v488_v23  ;;  %v538_v40 = vld [vmem:[#allocation2 + $0x6] sm:$0x1]  ;;  %v465_v41 = vsel %vm1255_vm0, %v464_v27, -1e+09  ;;  %vm1407_vm7 = vmand %vm1294_vm14, %vm611_vm1 }
  0xd6   :  { %v444_v30 = vsub.f32 %v442_v26, %v1283_v22  ;;  %v514_v42 = vadd.f32 0.05, %v513_v38  ;;  %v539_v43 = vadd.f32 0.05, %v538_v40  ;;  %v467_v46 = vperm.slane %v465_v41, 0  ;;  %vm1435_vm1 = vmand %vm1316_vm4, %vm636_vm9 }
  0xd7   :  { %v1321_v45 = vmax.f32 %v394_v34, 0.0  ;;  %v490_v47 = vsel %vm1272_vm8, %v489_v37, -1e+09  ;;  %v1326_v49 = vmax.f32 %v419_v35, 0.0  ;;  %vm661_vm11 = vcmp.ne.s32.totalorder %v1074_v36, 11 }
  0xd8   :  { %v492_v50 = vperm.slane %v490_v47, 0  ;;  %v515_v51 = vsel %vm1289_vm13, %v514_v42, -1e+09  ;;  %v540_v52 = vsel %vm1307_vm3, %v539_v43, -1e+09  ;;  %v1334_v54 = vmax.f32 %v444_v30, 0.0  ;;  %vm1457_vm3 = vmand %vm1342_vm2, %vm661_vm11 }
  0xd9   :  { %v1332_v53 = vld [vmem:[#allocation3 + $0x8] sm:$0xff]  ;;  %v469_v55 = vsub.f32 %v467_v46, %v1283_v22  ;;  %v517_v56 = vperm.slane %v515_v51, 0  ;;  %v542_v57 = vperm.slane %v540_v52, 0  ;;  %v563_v4 = vld [vmem:[#allocation2 + $0x7] sm:$0x1]  ;;  %vm1353_vm0 = vcmp.eq.s32.totalorder %v1086_v8, %v684_v32 }
  0xda   :  { %v395_v58 = vsub.f32 %v392_v15, %v1332_v53  ;;  %v420_v59 = vsub.f32 %v417_v16, %v1332_v53  ;;  %v445_v60 = vsub.f32 %v442_v26, %v1332_v53  ;;  %v470_v61 = vsub.f32 %v467_v46, %v1332_v53  ;;  %v588_v14 = vld [vmem:[#allocation2 + $0x8] sm:$0x1]  ;;  %v613_v21 = vld [vmem:[#allocation2 + $0x9] sm:$0x1]  ;;  %v638_v32 = vld [vmem:[#allocation2 + $0xa] sm:$0x1] }
  0xdb   :  { %v1347_v63 = vmax.f32 %v469_v55, 0.0  ;;  %v494_v0 = vsub.f32 %v492_v50, %v1283_v22  ;;  %v495_v1 = vsub.f32 %v492_v50, %v1332_v53  ;;  %v519_v3 = vsub.f32 %v517_v56, %v1283_v22  ;;  %v663_v39 = vld [vmem:[#allocation2 + $0xb] sm:$0x1]  ;;  %v688_v51 = vld [vmem:[#allocation2 + $0xc] sm:$0x1] }
  0xdc   :  { %vm686_vm8 = vcmp.ne.s32.totalorder %v1074_v36, 12  ;;  %v1358_v7 = vmax.f32 %v395_v58, 0.0  ;;  %v1360_v9 = vmax.f32 %v420_v59, 0.0  ;;  %v1362_v10 = vmax.f32 %v445_v60, 0.0 }
  0xdd   :  { %v1364_v11 = vmax.f32 %v470_v61, 0.0  ;;  %v1366_v15 = vmax.f32 %v494_v0, 0.0  ;;  %v1368_v16 = vmax.f32 %v495_v1, 0.0  ;;  %v520_v17 = vsub.f32 %v517_v56, %v1332_v53  ;;  %vm1475_vm2 = vmand %vm1353_vm0, %vm686_vm8 }
  0xde   :  { %v1371_v19 = vmax.f32 %v519_v3, 0.0  ;;  %v398_v26 = vadd.f32 %v1358_v7, %v1321_v45  ;;  %v423_v27 = vadd.f32 %v1360_v9, %v1326_v49  ;;  %v448_v23 = vadd.f32 %v1362_v10, %v1334_v54 }
  0xdf   :  { %v473_v25 = vadd.f32 %v1364_v11, %v1347_v63  ;;  %v498_v34 = vadd.f32 %v1368_v16, %v1366_v15  ;;  %v1399_v35 = vmax.f32 %v520_v17, 0.0  ;;  %v544_v37 = vsub.f32 %v542_v57, %v1283_v22 }
  0xe0   :  { %v545_v38 = vsub.f32 %v542_v57, %v1332_v53  ;;  %vm711_vm12 = vcmp.ne.s32.totalorder %v1074_v36, 13  ;;  %v424_v30 = vadd.f32 %v423_v27, %v398_v26  ;;  %v564_v41 = vadd.f32 0.05, %v563_v4 }
  0xe1   :  { %v589_v42 = vadd.f32 0.05, %v588_v14  ;;  %v614_v43 = vadd.f32 0.05, %v613_v21  ;;  %vm1420_vm13 = vcmp.eq.s32.totalorder %v1086_v8, %v734_v28  ;;  %vm736_vm14 = vcmp.ne.s32.totalorder %v1074_v36, 14  ;;  %vm1510_vm0 = vmand %vm1414_vm10, %vm711_vm12 }
  0xe2   :  { %v523_v46 = vadd.f32 %v1399_v35, %v1371_v19  ;;  %v1427_v33 = vmax.f32 %v544_v37, 0.0  ;;  %v1429_v47 = vmax.f32 %v545_v38, 0.0  ;;  %v639_v28 = vadd.f32 0.05, %v638_v32  ;;  %vm1518_vm8 = vmand %vm1420_vm13, %vm736_vm14 }
  0xe3   :  { %v449_v52 = vadd.f32 %v448_v23, %v424_v30  ;;  %v565_v55 = vsel %vm1377_vm15, %v564_v41, -1e+09  ;;  %v590_v56 = vsel %vm1393_vm5, %v589_v42, -1e+09  ;;  %v615_v57 = vsel %vm1407_vm7, %v614_v43, -1e+09 }
  0xe4   :  { %v548_v44 = vadd.f32 %v1429_v47, %v1427_v33  ;;  %v567_v58 = vperm.slane %v565_v55, 0  ;;  %v592_v59 = vperm.slane %v590_v56, 0  ;;  %v617_v60 = vperm.slane %v615_v57, 0 }
  0xe5   :  { %v474_v61 = vadd.f32 %v473_v25, %v449_v52  ;;  %v640_v0 = vsel %vm1435_vm1, %v639_v28, -1e+09  ;;  %v664_v1 = vadd.f32 0.05, %v663_v39  ;;  %v689_v3 = vadd.f32 0.05, %v688_v51 }
  0xe6   :  { %v569_v4 = vsub.f32 %v567_v58, %v1283_v22  ;;  %v570_v14 = vsub.f32 %v567_v58, %v1332_v53  ;;  %v594_v17 = vsub.f32 %v592_v59, %v1283_v22  ;;  %v595_v20 = vsub.f32 %v592_v59, %v1332_v53  ;;  %v738_v39 = vld [vmem:[#allocation2 + $0xe] sm:$0x1] }
  0xe7   :  { %vm1464_vm4 = vcmp.eq.s32.totalorder %v1086_v8, %v759_v48  ;;  %vm761_vm9 = vcmp.ne.s32.totalorder %v1074_v36, 15  ;;  %vm32_vm15 = vcmask 7168   ;;  %v499_v27 = vadd.f32 %v498_v34, %v474_v61  ;;  %v713_v8 = vld [vmem:[#allocation2 + $0xd] sm:$0x1] }
  0xe8   :  { %v619_v23 = vsub.f32 %v617_v60, %v1283_v22  ;;  %v620_v25 = vsub.f32 %v617_v60, %v1332_v53  ;;  %33 = vst.msk [vmem:[#allocation4] sm:$0xff] %vm32_vm15, %v980_v18  ;;  %v1481_v48 = vmax.f32 %v569_v4, 0.0  ;;  %v1483_v12 = vmax.f32 %v570_v14, 0.0  ;;  %vm1550_vm5 = vmand %vm1464_vm4, %vm761_vm9 }
  0xe9   :  { %v1485_v32 = vmax.f32 %v594_v17, 0.0  ;;  %v1487_v34 = vmax.f32 %v595_v20, 0.0  ;;  %34 = vst.msk [vmem:[#allocation4 + $0x8] sm:$0xff] %vm32_vm15, %v980_v18  ;;  %v524_v6 = vadd.f32 %v523_v46, %v499_v27  ;;  %v642_v5 = vperm.slane %v640_v0, 0 }
  0xea   :  { %v1491_v37 = vmax.f32 %v619_v23, 0.0  ;;  %v1493_v38 = vmax.f32 %v620_v25, 0.0  ;;  %v573_v30 = vadd.f32 %v1483_v12, %v1481_v48  ;;  %v665_v41 = vsel %vm1457_vm3, %v664_v1, -1e+09 }
  0xeb   :  { %v690_v42 = vsel %vm1475_vm2, %v689_v3, -1e+09  ;;  %vm400_vm11 = vcmp.gt.f32.partialorder %v1321_v45, 0.0  ;;  %v549_v43 = vadd.f32 %v548_v44, %v524_v6  ;;  %v598_v46 = vadd.f32 %v1487_v34, %v1485_v32  ;;  %v763_v3 = vld [vmem:[#allocation2 + $0xf] sm:$0x1] }
  0xec   :  { %v644_v50 = vsub.f32 %v642_v5, %v1283_v22  ;;  %v645_v28 = vsub.f32 %v642_v5, %v1332_v53  ;;  %v667_v52 = vperm.slane %v665_v41, 0  ;;  %v692_v55 = vperm.slane %v690_v42, 0 }
  0xed   :  { %v714_v56 = vadd.f32 0.05, %v713_v8  ;;  %v739_v44 = vadd.f32 0.05, %v738_v39  ;;  %v574_v58 = vadd.f32 %v573_v30, %v549_v43  ;;  %v623_v40 = vadd.f32 %v1493_v38, %v1491_v37 }
  0xee   :  { %v1524_v59 = vmax.f32 %v644_v50, 0.0  ;;  %v1526_v60 = vmax.f32 %v645_v28, 0.0  ;;  %v669_v61 = vsub.f32 %v667_v52, %v1283_v22  ;;  %v670_v0 = vsub.f32 %v667_v52, %v1332_v53 }
  0xef   :  { %v694_v1 = vsub.f32 %v692_v55, %v1283_v22  ;;  %v695_v31 = vsub.f32 %v692_v55, %v1332_v53  ;;  %v599_v4 = vadd.f32 %v598_v46, %v574_v58  ;;  %v715_v17 = vsel %vm1510_vm0, %v714_v56, -1e+09 }
  0xf0   :  { %v648_v14 = vadd.f32 %v1526_v60, %v1524_v59  ;;  %v740_v20 = vsel %vm1518_vm8, %v739_v44, -1e+09  ;;  %v1538_v21 = vmax.f32 %v669_v61, 0.0  ;;  %v1540_v27 = vmax.f32 %v670_v0, 0.0 }
  0xf1   :  { %v1542_v23 = vmax.f32 %v694_v1, 0.0  ;;  %v1544_v25 = vmax.f32 %v695_v31, 0.0  ;;  %v624_v62 = vadd.f32 %v623_v40, %v599_v4  ;;  %v717_v8 = vperm.slane %v715_v17, 0 }
  0xf2   :  { %v742_v6 = vperm.slane %v740_v20, 0  ;;  %v764_v39 = vadd.f32 0.05, %v763_v3  ;;  %v673_v30 = vadd.f32 %v1540_v27, %v1538_v21  ;;  %vm401_vm7 = vcmp.gt.f32.partialorder %v1358_v7, 0.0 }
  0xf3   :  { %v698_v41 = vadd.f32 %v1544_v25, %v1542_v23  ;;  %v866_v42 = vsel %vm400_vm11, 1.0, %v980_v18  ;;  %v649_v36 = vadd.f32 %v648_v14, %v624_v62  ;;  %v719_v26 = vsub.f32 %v717_v8, %v1283_v22 }
  0xf4   :  { %v720_v43 = vsub.f32 %v717_v8, %v1332_v53  ;;  %v744_v46 = vsub.f32 %v742_v6, %v1283_v22  ;;  %vm86_vm10 = vcmp.ge.s32.totalorder %v1026_v2, 0  ;;  %v745_v50 = vsub.f32 %v742_v6, %v1332_v53  ;;  %v783_v8 = vld [vmem:[#allocation5] sm:$0xff] }
  0xf5   :  { %v765_v28 = vsel %vm1550_vm5, %v764_v39, -1e+09  ;;  %v867_v7 = vsel %vm401_vm7, 1.0, %v980_v18  ;;  %vm425_vm12 = vcmp.gt.f32.partialorder %v1326_v49, 0.0  ;;  %v674_v45 = vadd.f32 %v673_v30, %v649_v36 }
  0xf6   :  { %v1571_v51 = vmax.f32 %v719_v26, 0.0  ;;  %v1573_v52 = vmax.f32 %v720_v43, 0.0  ;;  %v1575_v55 = vmax.f32 %v744_v46, 0.0  ;;  %v1577_v56 = vmax.f32 %v745_v50, 0.0 }
  0xf7   :  { %v767_v57 = vperm.slane %v765_v28, 0  ;;  %v406_v44 = vadd.f32 %v867_v7, %v866_v42  ;;  %vm426_vm13 = vcmp.gt.f32.partialorder %v1360_v9, 0.0  ;;  %v699_v58 = vadd.f32 %v698_v41, %v674_v45 }
  0xf8   :  { %v723_v40 = vadd.f32 %v1573_v52, %v1571_v51  ;;  %v869_v61 = vsel %vm425_vm12, 1.0, %v980_v18  ;;  %v870_v49 = vsel %vm426_vm13, 1.0, %v980_v18  ;;  %v748_v0 = vadd.f32 %v1577_v56, %v1575_v55 }
  0xf9   :  { %v769_v1 = vsub.f32 %v767_v57, %v1283_v22  ;;  %v770_v31 = vsub.f32 %v767_v57, %v1332_v53  ;;  %v431_v3 = vadd.f32 %v870_v49, %v869_v61  ;;  %vm450_vm14 = vcmp.gt.f32.partialorder %v1334_v54, 0.0 }
  0xfa   :  { %v724_v4 = vadd.f32 %v723_v40, %v699_v58  ;;  %vm451_vm1 = vcmp.gt.f32.partialorder %v1362_v10, 0.0  ;;  %vm475_vm3 = vcmp.gt.f32.partialorder %v1347_v63, 0.0  ;;  %v872_v20 = vsel %vm450_vm14, 1.0, %v980_v18 }
  0xfb   :  { %v1591_v9 = vmax.f32 %v769_v1, 0.0  ;;  %v1593_v14 = vmax.f32 %v770_v31, 0.0  ;;  %v432_v17 = vadd.f32 %v431_v3, %v406_v44  ;;  %v873_v22 = vsel %vm451_vm1, 1.0, %v980_v18  ;;  %v58_v39 = vpop.xlane.xlu2 %57 }
  0xfc   :  { %v749_v62 = vadd.f32 %v748_v0, %v724_v4  ;;  %vm476_vm4 = vcmp.gt.f32.partialorder %v1364_v11, 0.0  ;;  %v875_v53 = vsel %vm475_vm3, 1.0, %v980_v18  ;;  %v456_v10 = vadd.f32 %v873_v22, %v872_v20 }
  0xfd   :  { %v773_v54 = vadd.f32 %v1593_v14, %v1591_v9  ;;  %v876_v63 = vsel %vm476_vm4, 1.0, %v980_v18  ;;  %vm500_vm9 = vcmp.gt.f32.partialorder %v1366_v15, 0.0  ;;  %vm501_vm2 = vcmp.gt.f32.partialorder %v1368_v16, 0.0 }
  0xfe   :  { %v481_v6 = vadd.f32 %v876_v63, %v875_v53  ;;  %v878_v5 = vsel %vm500_vm9, 1.0, %v980_v18  ;;  %vm525_vm11 = vcmp.gt.f32.partialorder %v1371_v19, 0.0  ;;  %v457_v30 = vadd.f32 %v456_v10, %v432_v17  ;;  %v92_v17 = vld [vmem:[#allocation4] sm:$0xff] }
  0xff   :  { %v774_v11 = vadd.f32 %v773_v54, %v749_v62  ;;  %v879_v41 = vsel %vm501_vm2, 1.0, %v980_v18  ;;  %vm526_vm0 = vcmp.gt.f32.partialorder %v1399_v35, 0.0  ;;  %932 = vlog2.f32 %v58_v39 }
 0x100   :  { %v864_v15 = vsel %vm86_vm10, 1.0, %v980_v18  ;;  %v506_v42 = vadd.f32 %v879_v41, %v878_v5  ;;  %v882_v36 = vsel %vm526_vm0, 1.0, %v980_v18  ;;  %v482_v26 = vadd.f32 %v481_v6, %v457_v30 }
 0x101   :  { %v784_v16 = vadd.f32 %v783_v8, %v774_v11  ;;  %v881_v43 = vsel %vm525_vm11, 1.0, %v980_v18  ;;  %vm550_vm8 = vcmp.gt.f32.partialorder %v1427_v33, 0.0  ;;  %vm551_vm5 = vcmp.gt.f32.partialorder %v1429_v47, 0.0 }
 0x102   :  { %v531_v19 = vadd.f32 %v882_v36, %v881_v43  ;;  %vm575_vm7 = vcmp.gt.f32.partialorder %v1481_v48, 0.0  ;;  %vm576_vm12 = vcmp.gt.f32.partialorder %v1483_v12, 0.0  ;;  %v507_v2 = vadd.f32 %v506_v42, %v482_v26  ;;  %v93_v36 = vld [vmem:[#allocation4 + $0x8] sm:$0xff]  ;;  %v786_v43 = vld [vmem:[#allocation6] sm:$0xff] }
 0x103   :  { %785 = vst.msk [vmem:[#allocation5] sm:$0xff] %vm35_vm6, %v784_v16  ;;  %v884_v35 = vsel %vm550_vm8, 1.0, %v980_v18  ;;  %v885_v46 = vsel %vm551_vm5, 1.0, %v980_v18  ;;  %v888_v50 = vsel %vm576_vm12, 1.0, %v980_v18  ;;  %v887_v7 = vsel %vm575_vm7, 1.0, %v980_v18  ;;  %v61_v58 = vpop.xlane.xlu0 %60 }
 0x104   :  { %v556_v28 = vadd.f32 %v885_v46, %v884_v35  ;;  %vm600_vm10 = vcmp.gt.f32.partialorder %v1485_v32, 0.0  ;;  %vm601_vm13 = vcmp.gt.f32.partialorder %v1487_v34, 0.0  ;;  %v532_v33 = vadd.f32 %v531_v19, %v507_v2  ;;  %v82_v32 = vpop.xlane.xlu2 %81 }
 0x105   :  { %v890_v47 = vsel %vm600_vm10, 1.0, %v980_v18  ;;  %v891_v48 = vsel %vm601_vm13, 1.0, %v980_v18  ;;  %vm625_vm14 = vcmp.gt.f32.partialorder %v1491_v37, 0.0  ;;  %v933_v12 = vpop.eup %932  ;;  %v581_v45 = vadd.f32 %v888_v50, %v887_v7 }
 0x106   :  { %vm626_vm1 = vcmp.gt.f32.partialorder %v1493_v38, 0.0  ;;  %v893_v57 = vsel %vm625_vm14, 1.0, %v980_v18  ;;  %vm650_vm3 = vcmp.gt.f32.partialorder %v1524_v59, 0.0  ;;  %v63_v44 = vmul.f32 0.6931472, %v933_v12 }
 0x107   :  { %v557_v40 = vadd.f32 %v556_v28, %v532_v33  ;;  %v894_v34 = vsel %vm626_vm1, 1.0, %v980_v18  ;;  %vm651_vm4 = vcmp.gt.f32.partialorder %v1526_v60, 0.0  ;;  %934 = vlog2.f32 %v61_v58 }
 0x108   :  { %v606_v61 = vadd.f32 %v891_v48, %v890_v47  ;;  %v631_v49 = vadd.f32 %v894_v34, %v893_v57  ;;  %v896_v37 = vsel %vm650_vm3, 1.0, %v980_v18  ;;  %v66_v0 = vadd.f32 %v63_v44, %v1059_v24 }
 0x109   :  { %v582_v38 = vadd.f32 %v581_v45, %v557_v40  ;;  %v897_v1 = vsel %vm651_vm4, 1.0, %v980_v18  ;;  %vm675_vm9 = vcmp.gt.f32.partialorder %v1538_v21, 0.0  ;;  %vm676_vm2 = vcmp.gt.f32.partialorder %v1540_v27, 0.0 }
 0x10a   :  { %v805_v59 = vld [vmem:[#allocation5] sm:$0xff]  ;;  %v899_v31 = vsel %vm675_vm9, 1.0, %v980_v18  ;;  %vm700_vm11 = vcmp.gt.f32.partialorder %v1542_v23, 0.0  ;;  %vm701_vm0 = vcmp.gt.f32.partialorder %v1544_v25, 0.0  ;;  %v94_v60 = vsub.f32 %v66_v0, %v82_v32 }
 0x10b   :  { %v806_v3 = vsel %vm35_vm6, %v805_v59, 0.0  ;;  %v607_v4 = vadd.f32 %v606_v61, %v582_v38  ;;  %v900_v24 = vsel %vm676_vm2, 1.0, %v980_v18  ;;  %v656_v20 = vadd.f32 %v897_v1, %v896_v37 }
 0x10c   :  { %807 = vadd.xlane.f32.xlu2 %v806_v3  ;;  %v96_v62 = vmul.f32 %v864_v15, %v94_v60  ;;  %vm725_vm8 = vcmp.gt.f32.partialorder %v1571_v51, 0.0  ;;  %vm726_vm5 = vcmp.gt.f32.partialorder %v1573_v52, 0.0  ;;  %v681_v22 = vadd.f32 %v900_v24, %v899_v31 }
 0x10d   :  { %v632_v21 = vadd.f32 %v631_v49, %v607_v4  ;;  %v935_v27 = vpop.eup %934  ;;  %v902_v23 = vsel %vm700_vm11, 1.0, %v980_v18  ;;  %v903_v25 = vsel %vm701_vm0, 1.0, %v980_v18  ;;  %vm750_vm7 = vcmp.gt.f32.partialorder %v1575_v55, 0.0  ;;  %v85_v55 = vpop.xlane.xlu2 %84 }
 0x10e   :  { %v65_v53 = vmul.f32 0.6931472, %v935_v27  ;;  %v98_v54 = vadd.f32 %v96_v62, %v92_v17  ;;  %vm751_vm12 = vcmp.gt.f32.partialorder %v1577_v56, 0.0  ;;  %vm87_vm10 = vcmp.ge.s32.totalorder %v1048_v13, 0 }
 0x10f   :  { %v657_v10 = vadd.f32 %v656_v20, %v632_v21  ;;  %v905_v63 = vsel %vm725_vm8, 1.0, %v980_v18  ;;  %v906_v51 = vsel %vm726_vm5, 1.0, %v980_v18  ;;  %v706_v8 = vadd.f32 %v903_v25, %v902_v23 }
 0x110   :  { %101 = vst.msk [vmem:[#allocation4] sm:$0xff] %vm32_vm15, %v98_v54  ;;  %vm775_vm13 = vcmp.gt.f32.partialorder %v1591_v9, 0.0  ;;  %vm776_vm14 = vcmp.gt.f32.partialorder %v1593_v14, 0.0  ;;  %v908_v6 = vsel %vm750_vm7, 1.0, %v980_v18  ;;  %v909_v5 = vsel %vm751_vm12, 1.0, %v980_v18 }
 0x111   :  { %v682_v52 = vadd.f32 %v681_v22, %v657_v10  ;;  %v67_v56 = vadd.f32 %v65_v53, %v1067_v29  ;;  %v731_v39 = vadd.f32 %v906_v51, %v905_v63  ;;  %v865_v11 = vsel %vm87_vm10, 1.0, %v980_v18 }
 0x112   :  { %v911_v30 = vsel %vm775_vm13, 1.0, %v980_v18  ;;  %v912_v41 = vsel %vm776_vm14, 1.0, %v980_v18  ;;  %v756_v9 = vadd.f32 %v909_v5, %v908_v6  ;;  %vm846_vm9 = vcmask 0  }
 0x113   :  { %v707_v13 = vadd.f32 %v706_v8, %v682_v52  ;;  %v95_v15 = vsub.f32 %v67_v56, %v85_v55  ;;  %v781_v26 = vadd.f32 %v912_v41, %v911_v30 }
 0x115   :  { %v732_v42 = vadd.f32 %v731_v39, %v707_v13  ;;  %v97_v14 = vmul.f32 %v865_v11, %v95_v15 }
 0x117   :  { %v757_v16 = vadd.f32 %v756_v9, %v732_v42  ;;  %v99_v19 = vadd.f32 %v97_v14, %v93_v36  ;;  %v792_v50 = vld [vmem:[#allocation4] sm:$0xff] }
 0x118   :  { %v796_v33 = vsel %vm32_vm15, %v792_v50, 0.0 }
 0x119   :  { %v782_v2 = vadd.f32 %v781_v26, %v757_v16  ;;  %102 = vst.msk [vmem:[#allocation4 + $0x8] sm:$0xff] %vm32_vm15, %v99_v19 }
 0x11b   :  { %v787_v29 = vadd.f32 %v786_v43, %v782_v2 }
 0x11d   :  { %788 = vst.msk [vmem:[#allocation6] sm:$0xff] %vm35_vm6, %v787_v29 }
 0x120   :  { %v793_v18 = vld [vmem:[#allocation4 + $0x8] sm:$0xff] }
 0x121   :  { %v797_v28 = vsel %vm32_vm15, %v793_v18, 0.0 }
 0x122   :  { %v798_v48 = vadd.f32 %v797_v28, %v796_v33 }
 0x124   :  { %v815_v35 = vld [vmem:[#allocation6] sm:$0xff]  ;;  %v799_v57 = vrot.slane %v798_v48, 4 }
 0x125   :  { %v816_v46 = vsel %vm35_vm6, %v815_v35, 0.0 }
 0x126   :  { %817 = vadd.xlane.f32.xlu1 %v816_v46  ;;  %v800_v40 = vadd.f32 %v799_v57, %v798_v48 }
 0x128   :  { %v801_v37 = vrot.slane %v800_v40, 2 }
 0x12a   :  { %v802_v38 = vadd.f32 %v801_v37, %v800_v40 }
 0x12c   :  { %v803_v31 = vrot.slane %v802_v38, 1 }
 0x12e   :  { %v804_v24 = vadd.f32 %v803_v31, %v802_v38 }
 0x130   :  { %v843_v23 = vmul.f32 0.5, %v804_v24 }
 0x132   :  { %v844_v63 = vmul.f32 0.0625, %v843_v23 }
 0x17f   :  { %v808_v44 = vpop.xlane.xlu2 %807 }
 0x180   :  { %v809_v34 = vrot.slane %v808_v44, 4 }
 0x182   :  { %v810_v0 = vadd.f32 %v809_v34, %v808_v44 }
 0x184   :  { %v811_v1 = vrot.slane %v810_v0, 2 }
 0x186   :  { %v812_v60 = vadd.f32 %v811_v1, %v810_v0 }
 0x188   :  { %v813_v20 = vrot.slane %v812_v60, 1 }
 0x18a   :  { %v814_v25 = vadd.f32 %v813_v20, %v812_v60 }
 0x199   :  { %v818_v7 = vpop.xlane.xlu1 %817 }
 0x19a   :  { %v819_v47 = vrot.slane %v818_v7, 4 }
 0x19c   :  { %v820_v12 = vadd.f32 %v819_v47, %v818_v7 }
 0x19e   :  { %v821_v45 = vrot.slane %v820_v12, 2 }
 0x1a0   :  { %v822_v58 = vadd.f32 %v821_v45, %v820_v12 }
 0x1a2   :  { %v823_v32 = vrot.slane %v822_v58, 1 }
 0x1a4   :  { %v824_v61 = vadd.f32 %v823_v32, %v822_v58 }
 0x1a6   :  { %v826_v49 = vmax.f32 %v824_v61, 1.0  ;;  %vm825_vm4 = vcmp.gt.f32.partialorder %v824_v61, 0.0 }
 0x1a8   :  { %936 = vrcp.f32 %v826_v49  ;;  %v838_v17 = vand.u32 2147483648, %v826_v49  ;;  %v836_v21 = vand.u32 2147483647, %v826_v49  ;;  %vm832_vm15 = vweird.f32 %v826_v49 }
 0x1aa   :  { %v839_v22 = vor.u32 1.1754944e-38, %v838_v17  ;;  %vm837_vm3 = vcmp.eq.f32.partialorder %v836_v21, 8.507059e+37 }
 0x1ae   :  { %v937_v59 = vpop.eup %936 }
 0x1af   :  { %v828_v3 = vmul.f32 %v937_v59, %v826_v49  ;;  %vm833_vm6 = vweird.f32 %v937_v59 }
 0x1b0   :  { %vm834_vm1 = vmor %vm832_vm15, %vm833_vm6 }
 0x1b1   :  { %v829_v4 = vsub.f32 1.0, %v828_v3 }
 0x1b3   :  { %v830_v62 = vmul.f32 %v937_v59, %v829_v4 }
 0x1b5   :  { %v831_v27 = vadd.f32 %v937_v59, %v830_v62 }
 0x1b7   :  { %v835_v53 = vsel %vm834_vm1, %v937_v59, %v831_v27 }
 0x1b8   :  { %v840_v54 = vsel %vm837_vm3, %v839_v22, %v835_v53 }
 0x1b9   :  { %v841_v10 = vmul.f32 %v840_v54, %v814_v25 }
 0x1bb   :  { %v842_v51 = vsel %vm825_vm4, %v841_v10, 0.0 }
 0x1bc   :  { %v845_v52 = vadd.f32 %v844_v63, %v842_v51 }
 0x1be   :  { %847 = vst.msk [vmem:[#allocation9] sm:$0x1] %vm846_vm9, %v845_v52 }
 0x1bf   :  { %858 = dma.vmem_to_hbm [thread:$0]  %s854_s25, 16, %s856_s0, [#allocation10]  }
 0x1c0   :  { %976 = dma.done.wait [#allocation10], 16  }
 0x1c1   :  { %977 = vsyncadd [#allocation10], 4294967280 }
 0x1c2   :  { %863 = vsyncpa [#allocation10], 1 }

</bundles_post_ra>
